<compile_context>
chip_gen: v6e
topology: v6e:2x2x1
jax: 0.10.0
libtpu: 0.0.40
codegen_flags: <defaults>
</compile_context>

<pallas_src>
import functools

import jax
import jax.numpy as jnp
from jax.experimental import pallas as pl
from jax.experimental.pallas import tpu as pltpu

BN_EPS = 1e-5


# --------------------------- fused forward kernel ----------------------------
def fused_rnn_layers_kernel(x_ref, cw_ref, wih_t_ref, whh_t_ref,
                            wp_t_ref, w2_t_ref, o1_ref, o2_ref, *, n_iters):
    H = whh_t_ref.shape[0]          # d_rnn
    L = x_ref.shape[0]              # "sequence length" == batch size B
    w1 = cw_ref[0]                  # conv1 1x1 weight (scalar)
    w2 = cw_ref[1]                  # conv2 1x1 weight (scalar)

    wih_t = wih_t_ref[...]          # (d_model, 4H)
    whh_t = whh_t_ref[...]          # (H, 4H)

    def bn(x):
        # BatchNorm2d(1) in training mode on a (1,1,B,D) tensor: normalize by
        # mean / biased variance of ALL elements (gamma=1, beta=0).
        # Single-pass stats: E[x] and E[x^2].
        m = jnp.mean(x)
        v = jnp.mean(x * x) - m * m
        return (x - m) * jax.lax.rsqrt(v + BN_EPS)

    def conv_chain(x):
        x = jnp.maximum(bn(x) * w1, 0.0)   # bn -> conv1(1x1,no bias) -> relu_1 -> pool1(k=1)=id
        x = jnp.maximum(bn(x) * w1, 0.0)   # bn -> conv1 -> relu_1 -> pool1 again
        x = jnp.maximum(bn(x) * w2, 0.0)   # bn -> conv2 -> relu_2 -> pool2(k=1)=id
        return bn(x)                        # final bn before the LSTM

    def lstm(x):
        # Unbatched LSTM: x is (L, H_in); gate order i, f, g, o; no bias.
        # Input projection hoisted out of the recurrence (one MXU push).
        xw = jnp.dot(x, wih_t, preferred_element_type=jnp.float32)   # (L, 4H)
        h = jnp.zeros((1, H), jnp.float32)
        c = jnp.zeros((1, H), jnp.float32)
        rows = []
        for t in range(L):  # static unroll — L is known at trace time
            gates = xw[t:t + 1, :] + jnp.dot(
                h, whh_t, preferred_element_type=jnp.float32)         # (1, 4H)
            sg = jax.nn.sigmoid(gates)   # full-vreg EUP
            tg = jnp.tanh(gates)         # full-vreg EUP
            i = sg[:, 0:H]
            f = sg[:, H:2 * H]
            g = tg[:, 2 * H:3 * H]
            o = sg[:, 3 * H:4 * H]
            c = f * c + i * g
            h = o * jnp.tanh(c)
            rows.append(h)
        return jnp.concatenate(rows, axis=0)   # (L, H), single materialization

    out = x_ref[...]                 # (B, d_model) f32, stays in vregs throughout
    for _ in range(n_iters):
        out = conv_chain(out)
        out = lstm(out)

    y1 = jnp.dot(out, wp_t_ref[...], preferred_element_type=jnp.float32)  # (B, d_model)
    y2 = jnp.dot(out, w2_t_ref[...], preferred_element_type=jnp.float32)  # (B, d_rnn+1)

    def lsm_axis0(y):
        # LogSoftmax over what becomes dim=1 after the final transpose,
        # i.e. the batch axis (axis 0 here).
        m = jnp.max(y, axis=0, keepdims=True)
        z = y - m
        return z - jnp.log(jnp.sum(jnp.exp(z), axis=0, keepdims=True))

    o1_ref[...] = lsm_axis0(y1)
    o2_ref[...] = lsm_axis0(y2)


# ------------------------------- forward glue --------------------------------
def num_loop_iters(dropout):
    # Replicates the module's `while dropout_3 <= 1: if dropout_3 >= 1: break`.
    n, d3 = 0, 0.0
    while d3 <= 1:
        if d3 >= 1:
            break
        n += 1
        d3 += dropout
    return n


def rnn_layers_forward(enc_output, params, dropout):
    # LearnedSiLU: gathers row 0 of the seq axis -> (B, d_model) float32.
    out0 = enc_output[:, 0, :].astype(jnp.float32)
    B, d_model = out0.shape
    d_rnn = params["lstm_w_hh"].shape[1]
    n_iters = num_loop_iters(dropout)

    # 1x1 conv weights as a flat 1-D SMEM scalar array.
    conv_w = jnp.stack([params["conv1_w"], params["conv2_w"]]).astype(jnp.float32)

    kernel = functools.partial(fused_rnn_layers_kernel, n_iters=n_iters)
    y1, y2 = pl.pallas_call(
        kernel,
        out_shape=(jax.ShapeDtypeStruct((B, d_model), jnp.float32),
                   jax.ShapeDtypeStruct((B, d_rnn + 1), jnp.float32)),
        in_specs=[pl.BlockSpec(memory_space=pltpu.MemorySpace.VMEM),   # x0
                  pl.BlockSpec(memory_space=pltpu.MemorySpace.SMEM),   # conv scalars
                  pl.BlockSpec(memory_space=pltpu.MemorySpace.VMEM),   # W_ih^T
                  pl.BlockSpec(memory_space=pltpu.MemorySpace.VMEM),   # W_hh^T
                  pl.BlockSpec(memory_space=pltpu.MemorySpace.VMEM),   # proj^T
                  pl.BlockSpec(memory_space=pltpu.MemorySpace.VMEM)],  # proj2^T
        out_specs=(pl.BlockSpec(memory_space=pltpu.MemorySpace.VMEM),
                   pl.BlockSpec(memory_space=pltpu.MemorySpace.VMEM)),
    )(out0, conv_w,
      params["lstm_w_ih"].T, params["lstm_w_hh"].T,
      params["proj_w"].T, params["proj2_w"].T)

    # torch.transpose(out, 0, 1) on both outputs (log_softmax already applied
    # inside the kernel over the axis that becomes dim 1 after the transpose).
    return y1.T, y2.T


if __name__ == "__main__":
    # d_model must equal d_rnn for the module's while-loop to be shape-consistent.
    B, S, d_model, d_rnn = 4, 8, 32, 32
    dropout = 0.5  # -> 2 loop iterations; bn momentum = int(1/0.5) (no output effect)

    key = jax.random.PRNGKey(0)
    ks = jax.random.split(key, 7)
    enc_output = jax.random.normal(ks[0], (B, S, d_model), jnp.float32)

    stdv = 1.0 / (d_rnn ** 0.5)
    xav = (6.0 / (d_model + d_rnn)) ** 0.5
    params = {
        # 1x1 Conv2d, 1->1 channel, no bias => a single scalar weight each.
        "conv1_w": jax.random.normal(ks[1], (), jnp.float32) * 0.5 + 1.0,
        "conv2_w": jax.random.normal(ks[2], (), jnp.float32) * 0.5 + 1.0,
        # LSTM weights: (4*H, H_in) / (4*H, H), gate order i,f,g,o, no bias.
        "lstm_w_ih": jax.random.uniform(ks[3], (4 * d_rnn, d_model), jnp.float32, -stdv, stdv),
        "lstm_w_hh": jax.random.uniform(ks[4], (4 * d_rnn, d_rnn), jnp.float32, -stdv, stdv),
        # projection: Linear(d_rnn, d_model, bias=False), xavier_uniform_.
        "proj_w": jax.random.uniform(ks[5], (d_model, d_rnn), jnp.float32, -xav, xav),
        # projection_2: Linear(d_rnn, d_rnn+1, bias=False) built in forward().
        "proj2_w": jax.random.uniform(ks[6], (d_rnn + 1, d_rnn), jnp.float32, -stdv, stdv),
    }

    out, out_2 = rnn_layers_forward(enc_output, params, dropout)
    out = jax.block_until_ready(out)
    out_2 = jax.block_until_ready(out_2)
    assert out.shape == (d_model, B)
    assert out_2.shape == (d_rnn + 1, B)
    assert jnp.all(jnp.isfinite(out)) and jnp.all(jnp.isfinite(out_2))
    print("KERNEL_OK")
</pallas_src>

<mosaic_0001>
module attributes {stable_mosaic.version = 11 : i64} {
  func.func @fused_rnn_layers_kernel(%arg0: memref<4x32xf32, #tpu.memory_space<vmem>>, %arg1: memref<2xf32, #tpu.memory_space<smem>>, %arg2: memref<32x128xf32, #tpu.memory_space<vmem>>, %arg3: memref<32x128xf32, #tpu.memory_space<vmem>>, %arg4: memref<32x32xf32, #tpu.memory_space<vmem>>, %arg5: memref<32x33xf32, #tpu.memory_space<vmem>>, %arg6: memref<4x32xf32, #tpu.memory_space<vmem>>, %arg7: memref<4x33xf32, #tpu.memory_space<vmem>>) attributes {dimension_semantics = [], scalar_prefetch = 0 : i64, scratch_operands = 0 : i64, tpu.core_type = #tpu.core_type<tc>} {
    %c0 = arith.constant 0 : index
    %0 = memref.load %arg1[%c0] : memref<2xf32, #tpu.memory_space<smem>>
    %c1 = arith.constant 1 : index
    %1 = memref.load %arg1[%c1] : memref<2xf32, #tpu.memory_space<smem>>
    %c0_0 = arith.constant 0 : index
    %c0_1 = arith.constant 0 : index
    %2 = vector.load %arg2[%c0_0, %c0_1] : memref<32x128xf32, #tpu.memory_space<vmem>>, vector<32x128xf32>
    %c0_2 = arith.constant 0 : index
    %c0_3 = arith.constant 0 : index
    %3 = vector.load %arg3[%c0_2, %c0_3] : memref<32x128xf32, #tpu.memory_space<vmem>>, vector<32x128xf32>
    %c0_4 = arith.constant 0 : index
    %c0_5 = arith.constant 0 : index
    %4 = vector.load %arg0[%c0_4, %c0_5] : memref<4x32xf32, #tpu.memory_space<vmem>>, vector<4x32xf32>
    %5 = vector.shape_cast %4 : vector<4x32xf32> to vector<1x4x32xf32>
    %cst = arith.constant dense<0.000000e+00> : vector<1xf32>
    %6 = vector.multi_reduction <add>, %5, %cst [1, 2] : vector<1x4x32xf32> to vector<1xf32>
    %7 = vector.shape_cast %6 : vector<1xf32> to vector<1x1x1xf32>
    %8 = vector.extract %7[0, 0, 0] : f32 from vector<1x1x1xf32>
    %cst_6 = arith.constant 1.280000e+02 : f32
    %9 = arith.divf %8, %cst_6 : f32
    %10 = arith.mulf %4, %4 : vector<4x32xf32>
    %11 = vector.shape_cast %10 : vector<4x32xf32> to vector<1x4x32xf32>
    %cst_7 = arith.constant dense<0.000000e+00> : vector<1xf32>
    %12 = vector.multi_reduction <add>, %11, %cst_7 [1, 2] : vector<1x4x32xf32> to vector<1xf32>
    %13 = vector.shape_cast %12 : vector<1xf32> to vector<1x1x1xf32>
    %14 = vector.extract %13[0, 0, 0] : f32 from vector<1x1x1xf32>
    %cst_8 = arith.constant 1.280000e+02 : f32
    %15 = arith.divf %14, %cst_8 : f32
    %16 = arith.mulf %9, %9 : f32
    %17 = arith.subf %15, %16 : f32
    %18 = vector.broadcast %9 : f32 to vector<4x32xf32>
    %19 = arith.subf %4, %18 : vector<4x32xf32>
    %cst_9 = arith.constant 9.99999974E-6 : f32
    %20 = arith.addf %17, %cst_9 : f32
    %21 = math.rsqrt %20 : f32
    %22 = vector.broadcast %21 : f32 to vector<4x32xf32>
    %23 = arith.mulf %19, %22 : vector<4x32xf32>
    %24 = vector.broadcast %0 : f32 to vector<4x32xf32>
    %25 = arith.mulf %23, %24 : vector<4x32xf32>
    %cst_10 = arith.constant 0.000000e+00 : f32
    %26 = vector.broadcast %cst_10 : f32 to vector<4x32xf32>
    %27 = arith.maximumf %25, %26 : vector<4x32xf32>
    %28 = vector.shape_cast %27 : vector<4x32xf32> to vector<1x4x32xf32>
    %cst_11 = arith.constant dense<0.000000e+00> : vector<1xf32>
    %29 = vector.multi_reduction <add>, %28, %cst_11 [1, 2] : vector<1x4x32xf32> to vector<1xf32>
    %30 = vector.shape_cast %29 : vector<1xf32> to vector<1x1x1xf32>
    %31 = vector.extract %30[0, 0, 0] : f32 from vector<1x1x1xf32>
    %cst_12 = arith.constant 1.280000e+02 : f32
    %32 = arith.divf %31, %cst_12 : f32
    %33 = arith.mulf %27, %27 : vector<4x32xf32>
    %34 = vector.shape_cast %33 : vector<4x32xf32> to vector<1x4x32xf32>
    %cst_13 = arith.constant dense<0.000000e+00> : vector<1xf32>
    %35 = vector.multi_reduction <add>, %34, %cst_13 [1, 2] : vector<1x4x32xf32> to vector<1xf32>
    %36 = vector.shape_cast %35 : vector<1xf32> to vector<1x1x1xf32>
    %37 = vector.extract %36[0, 0, 0] : f32 from vector<1x1x1xf32>
    %cst_14 = arith.constant 1.280000e+02 : f32
    %38 = arith.divf %37, %cst_14 : f32
    %39 = arith.mulf %32, %32 : f32
    %40 = arith.subf %38, %39 : f32
    %41 = vector.broadcast %32 : f32 to vector<4x32xf32>
    %42 = arith.subf %27, %41 : vector<4x32xf32>
    %cst_15 = arith.constant 9.99999974E-6 : f32
    %43 = arith.addf %40, %cst_15 : f32
    %44 = math.rsqrt %43 : f32
    %45 = vector.broadcast %44 : f32 to vector<4x32xf32>
    %46 = arith.mulf %42, %45 : vector<4x32xf32>
    %47 = vector.broadcast %0 : f32 to vector<4x32xf32>
    %48 = arith.mulf %46, %47 : vector<4x32xf32>
    %cst_16 = arith.constant 0.000000e+00 : f32
    %49 = vector.broadcast %cst_16 : f32 to vector<4x32xf32>
    %50 = arith.maximumf %48, %49 : vector<4x32xf32>
    %51 = vector.shape_cast %50 : vector<4x32xf32> to vector<1x4x32xf32>
    %cst_17 = arith.constant dense<0.000000e+00> : vector<1xf32>
    %52 = vector.multi_reduction <add>, %51, %cst_17 [1, 2] : vector<1x4x32xf32> to vector<1xf32>
    %53 = vector.shape_cast %52 : vector<1xf32> to vector<1x1x1xf32>
    %54 = vector.extract %53[0, 0, 0] : f32 from vector<1x1x1xf32>
    %cst_18 = arith.constant 1.280000e+02 : f32
    %55 = arith.divf %54, %cst_18 : f32
    %56 = arith.mulf %50, %50 : vector<4x32xf32>
    %57 = vector.shape_cast %56 : vector<4x32xf32> to vector<1x4x32xf32>
    %cst_19 = arith.constant dense<0.000000e+00> : vector<1xf32>
    %58 = vector.multi_reduction <add>, %57, %cst_19 [1, 2] : vector<1x4x32xf32> to vector<1xf32>
    %59 = vector.shape_cast %58 : vector<1xf32> to vector<1x1x1xf32>
    %60 = vector.extract %59[0, 0, 0] : f32 from vector<1x1x1xf32>
    %cst_20 = arith.constant 1.280000e+02 : f32
    %61 = arith.divf %60, %cst_20 : f32
    %62 = arith.mulf %55, %55 : f32
    %63 = arith.subf %61, %62 : f32
    %64 = vector.broadcast %55 : f32 to vector<4x32xf32>
    %65 = arith.subf %50, %64 : vector<4x32xf32>
    %cst_21 = arith.constant 9.99999974E-6 : f32
    %66 = arith.addf %63, %cst_21 : f32
    %67 = math.rsqrt %66 : f32
    %68 = vector.broadcast %67 : f32 to vector<4x32xf32>
    %69 = arith.mulf %65, %68 : vector<4x32xf32>
    %70 = vector.broadcast %1 : f32 to vector<4x32xf32>
    %71 = arith.mulf %69, %70 : vector<4x32xf32>
    %cst_22 = arith.constant 0.000000e+00 : f32
    %72 = vector.broadcast %cst_22 : f32 to vector<4x32xf32>
    %73 = arith.maximumf %71, %72 : vector<4x32xf32>
    %74 = vector.shape_cast %73 : vector<4x32xf32> to vector<1x4x32xf32>
    %cst_23 = arith.constant dense<0.000000e+00> : vector<1xf32>
    %75 = vector.multi_reduction <add>, %74, %cst_23 [1, 2] : vector<1x4x32xf32> to vector<1xf32>
    %76 = vector.shape_cast %75 : vector<1xf32> to vector<1x1x1xf32>
    %77 = vector.extract %76[0, 0, 0] : f32 from vector<1x1x1xf32>
    %cst_24 = arith.constant 1.280000e+02 : f32
    %78 = arith.divf %77, %cst_24 : f32
    %79 = arith.mulf %73, %73 : vector<4x32xf32>
    %80 = vector.shape_cast %79 : vector<4x32xf32> to vector<1x4x32xf32>
    %cst_25 = arith.constant dense<0.000000e+00> : vector<1xf32>
    %81 = vector.multi_reduction <add>, %80, %cst_25 [1, 2] : vector<1x4x32xf32> to vector<1xf32>
    %82 = vector.shape_cast %81 : vector<1xf32> to vector<1x1x1xf32>
    %83 = vector.extract %82[0, 0, 0] : f32 from vector<1x1x1xf32>
    %cst_26 = arith.constant 1.280000e+02 : f32
    %84 = arith.divf %83, %cst_26 : f32
    %85 = arith.mulf %78, %78 : f32
    %86 = arith.subf %84, %85 : f32
    %87 = vector.broadcast %78 : f32 to vector<4x32xf32>
    %88 = arith.subf %73, %87 : vector<4x32xf32>
    %cst_27 = arith.constant 9.99999974E-6 : f32
    %89 = arith.addf %86, %cst_27 : f32
    %90 = math.rsqrt %89 : f32
    %91 = vector.broadcast %90 : f32 to vector<4x32xf32>
    %92 = arith.mulf %88, %91 : vector<4x32xf32>
    %cst_28 = arith.constant dense<0.000000e+00> : vector<4x128xf32>
    %93 = tpu.matmul %92, %2, %cst_28 {dimension_numbers = #tpu.dot_dimension_numbers<[1], [0], [0], [1], [0, 0, 1, 1], [], []>} : vector<4x32xf32>, vector<32x128xf32>, vector<4x128xf32> -> vector<4x128xf32>
    %cst_29 = arith.constant 0.000000e+00 : f32
    %94 = vector.broadcast %cst_29 : f32 to vector<1x32xf32>
    %cst_30 = arith.constant 0.000000e+00 : f32
    %95 = vector.broadcast %cst_30 : f32 to vector<1x32xf32>
    %96 = vector.extract_strided_slice %93 {offsets = [0, 0], sizes = [1, 128], strides = [1, 1]} : vector<4x128xf32> to vector<1x128xf32>
    %cst_31 = arith.constant dense<0.000000e+00> : vector<1x128xf32>
    %97 = tpu.matmul %94, %3, %cst_31 {dimension_numbers = #tpu.dot_dimension_numbers<[1], [0], [0], [1], [0, 0, 1, 1], [], []>} : vector<1x32xf32>, vector<32x128xf32>, vector<1x128xf32> -> vector<1x128xf32>
    %98 = arith.addf %96, %97 : vector<1x128xf32>
    %99 = arith.negf %98 : vector<1x128xf32>
    %100 = math.exp %99 : vector<1x128xf32>
    %cst_32 = arith.constant 1.000000e+00 : f32
    %101 = vector.broadcast %cst_32 : f32 to vector<1x128xf32>
    %102 = arith.addf %101, %100 : vector<1x128xf32>
    %103 = arith.divf %101, %102 : vector<1x128xf32>
    %104 = math.tanh %98 : vector<1x128xf32>
    %105 = vector.extract_strided_slice %103 {offsets = [0, 0], sizes = [1, 32], strides = [1, 1]} : vector<1x128xf32> to vector<1x32xf32>
    %106 = vector.extract_strided_slice %103 {offsets = [0, 32], sizes = [1, 32], strides = [1, 1]} : vector<1x128xf32> to vector<1x32xf32>
    %107 = vector.extract_strided_slice %104 {offsets = [0, 64], sizes = [1, 32], strides = [1, 1]} : vector<1x128xf32> to vector<1x32xf32>
    %108 = vector.extract_strided_slice %103 {offsets = [0, 96], sizes = [1, 32], strides = [1, 1]} : vector<1x128xf32> to vector<1x32xf32>
    %109 = arith.mulf %106, %95 : vector<1x32xf32>
    %110 = arith.mulf %105, %107 : vector<1x32xf32>
    %111 = arith.addf %109, %110 : vector<1x32xf32>
    %112 = math.tanh %111 : vector<1x32xf32>
    %113 = arith.mulf %108, %112 : vector<1x32xf32>
    %114 = vector.extract_strided_slice %93 {offsets = [1, 0], sizes = [1, 128], strides = [1, 1]} : vector<4x128xf32> to vector<1x128xf32>
    %cst_33 = arith.constant dense<0.000000e+00> : vector<1x128xf32>
    %115 = tpu.matmul %113, %3, %cst_33 {dimension_numbers = #tpu.dot_dimension_numbers<[1], [0], [0], [1], [0, 0, 1, 1], [], []>} : vector<1x32xf32>, vector<32x128xf32>, vector<1x128xf32> -> vector<1x128xf32>
    %116 = arith.addf %114, %115 : vector<1x128xf32>
    %117 = arith.negf %116 : vector<1x128xf32>
    %118 = math.exp %117 : vector<1x128xf32>
    %cst_34 = arith.constant 1.000000e+00 : f32
    %119 = vector.broadcast %cst_34 : f32 to vector<1x128xf32>
    %120 = arith.addf %119, %118 : vector<1x128xf32>
    %121 = arith.divf %119, %120 : vector<1x128xf32>
    %122 = math.tanh %116 : vector<1x128xf32>
    %123 = vector.extract_strided_slice %121 {offsets = [0, 0], sizes = [1, 32], strides = [1, 1]} : vector<1x128xf32> to vector<1x32xf32>
    %124 = vector.extract_strided_slice %121 {offsets = [0, 32], sizes = [1, 32], strides = [1, 1]} : vector<1x128xf32> to vector<1x32xf32>
    %125 = vector.extract_strided_slice %122 {offsets = [0, 64], sizes = [1, 32], strides = [1, 1]} : vector<1x128xf32> to vector<1x32xf32>
    %126 = vector.extract_strided_slice %121 {offsets = [0, 96], sizes = [1, 32], strides = [1, 1]} : vector<1x128xf32> to vector<1x32xf32>
    %127 = arith.mulf %124, %111 : vector<1x32xf32>
    %128 = arith.mulf %123, %125 : vector<1x32xf32>
    %129 = arith.addf %127, %128 : vector<1x32xf32>
    %130 = math.tanh %129 : vector<1x32xf32>
    %131 = arith.mulf %126, %130 : vector<1x32xf32>
    %132 = vector.extract_strided_slice %93 {offsets = [2, 0], sizes = [1, 128], strides = [1, 1]} : vector<4x128xf32> to vector<1x128xf32>
    %cst_35 = arith.constant dense<0.000000e+00> : vector<1x128xf32>
    %133 = tpu.matmul %131, %3, %cst_35 {dimension_numbers = #tpu.dot_dimension_numbers<[1], [0], [0], [1], [0, 0, 1, 1], [], []>} : vector<1x32xf32>, vector<32x128xf32>, vector<1x128xf32> -> vector<1x128xf32>
    %134 = arith.addf %132, %133 : vector<1x128xf32>
    %135 = arith.negf %134 : vector<1x128xf32>
    %136 = math.exp %135 : vector<1x128xf32>
    %cst_36 = arith.constant 1.000000e+00 : f32
    %137 = vector.broadcast %cst_36 : f32 to vector<1x128xf32>
    %138 = arith.addf %137, %136 : vector<1x128xf32>
    %139 = arith.divf %137, %138 : vector<1x128xf32>
    %140 = math.tanh %134 : vector<1x128xf32>
    %141 = vector.extract_strided_slice %139 {offsets = [0, 0], sizes = [1, 32], strides = [1, 1]} : vector<1x128xf32> to vector<1x32xf32>
    %142 = vector.extract_strided_slice %139 {offsets = [0, 32], sizes = [1, 32], strides = [1, 1]} : vector<1x128xf32> to vector<1x32xf32>
    %143 = vector.extract_strided_slice %140 {offsets = [0, 64], sizes = [1, 32], strides = [1, 1]} : vector<1x128xf32> to vector<1x32xf32>
    %144 = vector.extract_strided_slice %139 {offsets = [0, 96], sizes = [1, 32], strides = [1, 1]} : vector<1x128xf32> to vector<1x32xf32>
    %145 = arith.mulf %142, %129 : vector<1x32xf32>
    %146 = arith.mulf %141, %143 : vector<1x32xf32>
    %147 = arith.addf %145, %146 : vector<1x32xf32>
    %148 = math.tanh %147 : vector<1x32xf32>
    %149 = arith.mulf %144, %148 : vector<1x32xf32>
    %150 = vector.extract_strided_slice %93 {offsets = [3, 0], sizes = [1, 128], strides = [1, 1]} : vector<4x128xf32> to vector<1x128xf32>
    %cst_37 = arith.constant dense<0.000000e+00> : vector<1x128xf32>
    %151 = tpu.matmul %149, %3, %cst_37 {dimension_numbers = #tpu.dot_dimension_numbers<[1], [0], [0], [1], [0, 0, 1, 1], [], []>} : vector<1x32xf32>, vector<32x128xf32>, vector<1x128xf32> -> vector<1x128xf32>
    %152 = arith.addf %150, %151 : vector<1x128xf32>
    %153 = arith.negf %152 : vector<1x128xf32>
    %154 = math.exp %153 : vector<1x128xf32>
    %cst_38 = arith.constant 1.000000e+00 : f32
    %155 = vector.broadcast %cst_38 : f32 to vector<1x128xf32>
    %156 = arith.addf %155, %154 : vector<1x128xf32>
    %157 = arith.divf %155, %156 : vector<1x128xf32>
    %158 = math.tanh %152 : vector<1x128xf32>
    %159 = vector.extract_strided_slice %157 {offsets = [0, 0], sizes = [1, 32], strides = [1, 1]} : vector<1x128xf32> to vector<1x32xf32>
    %160 = vector.extract_strided_slice %157 {offsets = [0, 32], sizes = [1, 32], strides = [1, 1]} : vector<1x128xf32> to vector<1x32xf32>
    %161 = vector.extract_strided_slice %158 {offsets = [0, 64], sizes = [1, 32], strides = [1, 1]} : vector<1x128xf32> to vector<1x32xf32>
    %162 = vector.extract_strided_slice %157 {offsets = [0, 96], sizes = [1, 32], strides = [1, 1]} : vector<1x128xf32> to vector<1x32xf32>
    %163 = arith.mulf %160, %147 : vector<1x32xf32>
    %164 = arith.mulf %159, %161 : vector<1x32xf32>
    %165 = arith.addf %163, %164 : vector<1x32xf32>
    %166 = math.tanh %165 : vector<1x32xf32>
    %167 = arith.mulf %162, %166 : vector<1x32xf32>
    %168 = tpu.concatenate %113, %131, %149, %167 in 0 : vector<1x32xf32>, vector<1x32xf32>, vector<1x32xf32>, vector<1x32xf32> -> vector<4x32xf32>
    %169 = vector.shape_cast %168 : vector<4x32xf32> to vector<1x4x32xf32>
    %cst_39 = arith.constant dense<0.000000e+00> : vector<1xf32>
    %170 = vector.multi_reduction <add>, %169, %cst_39 [1, 2] : vector<1x4x32xf32> to vector<1xf32>
    %171 = vector.shape_cast %170 : vector<1xf32> to vector<1x1x1xf32>
    %172 = vector.extract %171[0, 0, 0] : f32 from vector<1x1x1xf32>
    %cst_40 = arith.constant 1.280000e+02 : f32
    %173 = arith.divf %172, %cst_40 : f32
    %174 = arith.mulf %168, %168 : vector<4x32xf32>
    %175 = vector.shape_cast %174 : vector<4x32xf32> to vector<1x4x32xf32>
    %cst_41 = arith.constant dense<0.000000e+00> : vector<1xf32>
    %176 = vector.multi_reduction <add>, %175, %cst_41 [1, 2] : vector<1x4x32xf32> to vector<1xf32>
    %177 = vector.shape_cast %176 : vector<1xf32> to vector<1x1x1xf32>
    %178 = vector.extract %177[0, 0, 0] : f32 from vector<1x1x1xf32>
    %cst_42 = arith.constant 1.280000e+02 : f32
    %179 = arith.divf %178, %cst_42 : f32
    %180 = arith.mulf %173, %173 : f32
    %181 = arith.subf %179, %180 : f32
    %182 = vector.broadcast %173 : f32 to vector<4x32xf32>
    %183 = arith.subf %168, %182 : vector<4x32xf32>
    %cst_43 = arith.constant 9.99999974E-6 : f32
    %184 = arith.addf %181, %cst_43 : f32
    %185 = math.rsqrt %184 : f32
    %186 = vector.broadcast %185 : f32 to vector<4x32xf32>
    %187 = arith.mulf %183, %186 : vector<4x32xf32>
    %188 = vector.broadcast %0 : f32 to vector<4x32xf32>
    %189 = arith.mulf %187, %188 : vector<4x32xf32>
    %cst_44 = arith.constant 0.000000e+00 : f32
    %190 = vector.broadcast %cst_44 : f32 to vector<4x32xf32>
    %191 = arith.maximumf %189, %190 : vector<4x32xf32>
    %192 = vector.shape_cast %191 : vector<4x32xf32> to vector<1x4x32xf32>
    %cst_45 = arith.constant dense<0.000000e+00> : vector<1xf32>
    %193 = vector.multi_reduction <add>, %192, %cst_45 [1, 2] : vector<1x4x32xf32> to vector<1xf32>
    %194 = vector.shape_cast %193 : vector<1xf32> to vector<1x1x1xf32>
    %195 = vector.extract %194[0, 0, 0] : f32 from vector<1x1x1xf32>
    %cst_46 = arith.constant 1.280000e+02 : f32
    %196 = arith.divf %195, %cst_46 : f32
    %197 = arith.mulf %191, %191 : vector<4x32xf32>
    %198 = vector.shape_cast %197 : vector<4x32xf32> to vector<1x4x32xf32>
    %cst_47 = arith.constant dense<0.000000e+00> : vector<1xf32>
    %199 = vector.multi_reduction <add>, %198, %cst_47 [1, 2] : vector<1x4x32xf32> to vector<1xf32>
    %200 = vector.shape_cast %199 : vector<1xf32> to vector<1x1x1xf32>
    %201 = vector.extract %200[0, 0, 0] : f32 from vector<1x1x1xf32>
    %cst_48 = arith.constant 1.280000e+02 : f32
    %202 = arith.divf %201, %cst_48 : f32
    %203 = arith.mulf %196, %196 : f32
    %204 = arith.subf %202, %203 : f32
    %205 = vector.broadcast %196 : f32 to vector<4x32xf32>
    %206 = arith.subf %191, %205 : vector<4x32xf32>
    %cst_49 = arith.constant 9.99999974E-6 : f32
    %207 = arith.addf %204, %cst_49 : f32
    %208 = math.rsqrt %207 : f32
    %209 = vector.broadcast %208 : f32 to vector<4x32xf32>
    %210 = arith.mulf %206, %209 : vector<4x32xf32>
    %211 = vector.broadcast %0 : f32 to vector<4x32xf32>
    %212 = arith.mulf %210, %211 : vector<4x32xf32>
    %cst_50 = arith.constant 0.000000e+00 : f32
    %213 = vector.broadcast %cst_50 : f32 to vector<4x32xf32>
    %214 = arith.maximumf %212, %213 : vector<4x32xf32>
    %215 = vector.shape_cast %214 : vector<4x32xf32> to vector<1x4x32xf32>
    %cst_51 = arith.constant dense<0.000000e+00> : vector<1xf32>
    %216 = vector.multi_reduction <add>, %215, %cst_51 [1, 2] : vector<1x4x32xf32> to vector<1xf32>
    %217 = vector.shape_cast %216 : vector<1xf32> to vector<1x1x1xf32>
    %218 = vector.extract %217[0, 0, 0] : f32 from vector<1x1x1xf32>
    %cst_52 = arith.constant 1.280000e+02 : f32
    %219 = arith.divf %218, %cst_52 : f32
    %220 = arith.mulf %214, %214 : vector<4x32xf32>
    %221 = vector.shape_cast %220 : vector<4x32xf32> to vector<1x4x32xf32>
    %cst_53 = arith.constant dense<0.000000e+00> : vector<1xf32>
    %222 = vector.multi_reduction <add>, %221, %cst_53 [1, 2] : vector<1x4x32xf32> to vector<1xf32>
    %223 = vector.shape_cast %222 : vector<1xf32> to vector<1x1x1xf32>
    %224 = vector.extract %223[0, 0, 0] : f32 from vector<1x1x1xf32>
    %cst_54 = arith.constant 1.280000e+02 : f32
    %225 = arith.divf %224, %cst_54 : f32
    %226 = arith.mulf %219, %219 : f32
    %227 = arith.subf %225, %226 : f32
    %228 = vector.broadcast %219 : f32 to vector<4x32xf32>
    %229 = arith.subf %214, %228 : vector<4x32xf32>
    %cst_55 = arith.constant 9.99999974E-6 : f32
    %230 = arith.addf %227, %cst_55 : f32
    %231 = math.rsqrt %230 : f32
    %232 = vector.broadcast %231 : f32 to vector<4x32xf32>
    %233 = arith.mulf %229, %232 : vector<4x32xf32>
    %234 = vector.broadcast %1 : f32 to vector<4x32xf32>
    %235 = arith.mulf %233, %234 : vector<4x32xf32>
    %cst_56 = arith.constant 0.000000e+00 : f32
    %236 = vector.broadcast %cst_56 : f32 to vector<4x32xf32>
    %237 = arith.maximumf %235, %236 : vector<4x32xf32>
    %238 = vector.shape_cast %237 : vector<4x32xf32> to vector<1x4x32xf32>
    %cst_57 = arith.constant dense<0.000000e+00> : vector<1xf32>
    %239 = vector.multi_reduction <add>, %238, %cst_57 [1, 2] : vector<1x4x32xf32> to vector<1xf32>
    %240 = vector.shape_cast %239 : vector<1xf32> to vector<1x1x1xf32>
    %241 = vector.extract %240[0, 0, 0] : f32 from vector<1x1x1xf32>
    %cst_58 = arith.constant 1.280000e+02 : f32
    %242 = arith.divf %241, %cst_58 : f32
    %243 = arith.mulf %237, %237 : vector<4x32xf32>
    %244 = vector.shape_cast %243 : vector<4x32xf32> to vector<1x4x32xf32>
    %cst_59 = arith.constant dense<0.000000e+00> : vector<1xf32>
    %245 = vector.multi_reduction <add>, %244, %cst_59 [1, 2] : vector<1x4x32xf32> to vector<1xf32>
    %246 = vector.shape_cast %245 : vector<1xf32> to vector<1x1x1xf32>
    %247 = vector.extract %246[0, 0, 0] : f32 from vector<1x1x1xf32>
    %cst_60 = arith.constant 1.280000e+02 : f32
    %248 = arith.divf %247, %cst_60 : f32
    %249 = arith.mulf %242, %242 : f32
    %250 = arith.subf %248, %249 : f32
    %251 = vector.broadcast %242 : f32 to vector<4x32xf32>
    %252 = arith.subf %237, %251 : vector<4x32xf32>
    %cst_61 = arith.constant 9.99999974E-6 : f32
    %253 = arith.addf %250, %cst_61 : f32
    %254 = math.rsqrt %253 : f32
    %255 = vector.broadcast %254 : f32 to vector<4x32xf32>
    %256 = arith.mulf %252, %255 : vector<4x32xf32>
    %cst_62 = arith.constant dense<0.000000e+00> : vector<4x128xf32>
    %257 = tpu.matmul %256, %2, %cst_62 {dimension_numbers = #tpu.dot_dimension_numbers<[1], [0], [0], [1], [0, 0, 1, 1], [], []>} : vector<4x32xf32>, vector<32x128xf32>, vector<4x128xf32> -> vector<4x128xf32>
    %cst_63 = arith.constant 0.000000e+00 : f32
    %258 = vector.broadcast %cst_63 : f32 to vector<1x32xf32>
    %cst_64 = arith.constant 0.000000e+00 : f32
    %259 = vector.broadcast %cst_64 : f32 to vector<1x32xf32>
    %260 = vector.extract_strided_slice %257 {offsets = [0, 0], sizes = [1, 128], strides = [1, 1]} : vector<4x128xf32> to vector<1x128xf32>
    %cst_65 = arith.constant dense<0.000000e+00> : vector<1x128xf32>
    %261 = tpu.matmul %258, %3, %cst_65 {dimension_numbers = #tpu.dot_dimension_numbers<[1], [0], [0], [1], [0, 0, 1, 1], [], []>} : vector<1x32xf32>, vector<32x128xf32>, vector<1x128xf32> -> vector<1x128xf32>
    %262 = arith.addf %260, %261 : vector<1x128xf32>
    %263 = arith.negf %262 : vector<1x128xf32>
    %264 = math.exp %263 : vector<1x128xf32>
    %cst_66 = arith.constant 1.000000e+00 : f32
    %265 = vector.broadcast %cst_66 : f32 to vector<1x128xf32>
    %266 = arith.addf %265, %264 : vector<1x128xf32>
    %267 = arith.divf %265, %266 : vector<1x128xf32>
    %268 = math.tanh %262 : vector<1x128xf32>
    %269 = vector.extract_strided_slice %267 {offsets = [0, 0], sizes = [1, 32], strides = [1, 1]} : vector<1x128xf32> to vector<1x32xf32>
    %270 = vector.extract_strided_slice %267 {offsets = [0, 32], sizes = [1, 32], strides = [1, 1]} : vector<1x128xf32> to vector<1x32xf32>
    %271 = vector.extract_strided_slice %268 {offsets = [0, 64], sizes = [1, 32], strides = [1, 1]} : vector<1x128xf32> to vector<1x32xf32>
    %272 = vector.extract_strided_slice %267 {offsets = [0, 96], sizes = [1, 32], strides = [1, 1]} : vector<1x128xf32> to vector<1x32xf32>
    %273 = arith.mulf %270, %259 : vector<1x32xf32>
    %274 = arith.mulf %269, %271 : vector<1x32xf32>
    %275 = arith.addf %273, %274 : vector<1x32xf32>
    %276 = math.tanh %275 : vector<1x32xf32>
    %277 = arith.mulf %272, %276 : vector<1x32xf32>
    %278 = vector.extract_strided_slice %257 {offsets = [1, 0], sizes = [1, 128], strides = [1, 1]} : vector<4x128xf32> to vector<1x128xf32>
    %cst_67 = arith.constant dense<0.000000e+00> : vector<1x128xf32>
    %279 = tpu.matmul %277, %3, %cst_67 {dimension_numbers = #tpu.dot_dimension_numbers<[1], [0], [0], [1], [0, 0, 1, 1], [], []>} : vector<1x32xf32>, vector<32x128xf32>, vector<1x128xf32> -> vector<1x128xf32>
    %280 = arith.addf %278, %279 : vector<1x128xf32>
    %281 = arith.negf %280 : vector<1x128xf32>
    %282 = math.exp %281 : vector<1x128xf32>
    %cst_68 = arith.constant 1.000000e+00 : f32
    %283 = vector.broadcast %cst_68 : f32 to vector<1x128xf32>
    %284 = arith.addf %283, %282 : vector<1x128xf32>
    %285 = arith.divf %283, %284 : vector<1x128xf32>
    %286 = math.tanh %280 : vector<1x128xf32>
    %287 = vector.extract_strided_slice %285 {offsets = [0, 0], sizes = [1, 32], strides = [1, 1]} : vector<1x128xf32> to vector<1x32xf32>
    %288 = vector.extract_strided_slice %285 {offsets = [0, 32], sizes = [1, 32], strides = [1, 1]} : vector<1x128xf32> to vector<1x32xf32>
    %289 = vector.extract_strided_slice %286 {offsets = [0, 64], sizes = [1, 32], strides = [1, 1]} : vector<1x128xf32> to vector<1x32xf32>
    %290 = vector.extract_strided_slice %285 {offsets = [0, 96], sizes = [1, 32], strides = [1, 1]} : vector<1x128xf32> to vector<1x32xf32>
    %291 = arith.mulf %288, %275 : vector<1x32xf32>
    %292 = arith.mulf %287, %289 : vector<1x32xf32>
    %293 = arith.addf %291, %292 : vector<1x32xf32>
    %294 = math.tanh %293 : vector<1x32xf32>
    %295 = arith.mulf %290, %294 : vector<1x32xf32>
    %296 = vector.extract_strided_slice %257 {offsets = [2, 0], sizes = [1, 128], strides = [1, 1]} : vector<4x128xf32> to vector<1x128xf32>
    %cst_69 = arith.constant dense<0.000000e+00> : vector<1x128xf32>
    %297 = tpu.matmul %295, %3, %cst_69 {dimension_numbers = #tpu.dot_dimension_numbers<[1], [0], [0], [1], [0, 0, 1, 1], [], []>} : vector<1x32xf32>, vector<32x128xf32>, vector<1x128xf32> -> vector<1x128xf32>
    %298 = arith.addf %296, %297 : vector<1x128xf32>
    %299 = arith.negf %298 : vector<1x128xf32>
    %300 = math.exp %299 : vector<1x128xf32>
    %cst_70 = arith.constant 1.000000e+00 : f32
    %301 = vector.broadcast %cst_70 : f32 to vector<1x128xf32>
    %302 = arith.addf %301, %300 : vector<1x128xf32>
    %303 = arith.divf %301, %302 : vector<1x128xf32>
    %304 = math.tanh %298 : vector<1x128xf32>
    %305 = vector.extract_strided_slice %303 {offsets = [0, 0], sizes = [1, 32], strides = [1, 1]} : vector<1x128xf32> to vector<1x32xf32>
    %306 = vector.extract_strided_slice %303 {offsets = [0, 32], sizes = [1, 32], strides = [1, 1]} : vector<1x128xf32> to vector<1x32xf32>
    %307 = vector.extract_strided_slice %304 {offsets = [0, 64], sizes = [1, 32], strides = [1, 1]} : vector<1x128xf32> to vector<1x32xf32>
    %308 = vector.extract_strided_slice %303 {offsets = [0, 96], sizes = [1, 32], strides = [1, 1]} : vector<1x128xf32> to vector<1x32xf32>
    %309 = arith.mulf %306, %293 : vector<1x32xf32>
    %310 = arith.mulf %305, %307 : vector<1x32xf32>
    %311 = arith.addf %309, %310 : vector<1x32xf32>
    %312 = math.tanh %311 : vector<1x32xf32>
    %313 = arith.mulf %308, %312 : vector<1x32xf32>
    %314 = vector.extract_strided_slice %257 {offsets = [3, 0], sizes = [1, 128], strides = [1, 1]} : vector<4x128xf32> to vector<1x128xf32>
    %cst_71 = arith.constant dense<0.000000e+00> : vector<1x128xf32>
    %315 = tpu.matmul %313, %3, %cst_71 {dimension_numbers = #tpu.dot_dimension_numbers<[1], [0], [0], [1], [0, 0, 1, 1], [], []>} : vector<1x32xf32>, vector<32x128xf32>, vector<1x128xf32> -> vector<1x128xf32>
    %316 = arith.addf %314, %315 : vector<1x128xf32>
    %317 = arith.negf %316 : vector<1x128xf32>
    %318 = math.exp %317 : vector<1x128xf32>
    %cst_72 = arith.constant 1.000000e+00 : f32
    %319 = vector.broadcast %cst_72 : f32 to vector<1x128xf32>
    %320 = arith.addf %319, %318 : vector<1x128xf32>
    %321 = arith.divf %319, %320 : vector<1x128xf32>
    %322 = math.tanh %316 : vector<1x128xf32>
    %323 = vector.extract_strided_slice %321 {offsets = [0, 0], sizes = [1, 32], strides = [1, 1]} : vector<1x128xf32> to vector<1x32xf32>
    %324 = vector.extract_strided_slice %321 {offsets = [0, 32], sizes = [1, 32], strides = [1, 1]} : vector<1x128xf32> to vector<1x32xf32>
    %325 = vector.extract_strided_slice %322 {offsets = [0, 64], sizes = [1, 32], strides = [1, 1]} : vector<1x128xf32> to vector<1x32xf32>
    %326 = vector.extract_strided_slice %321 {offsets = [0, 96], sizes = [1, 32], strides = [1, 1]} : vector<1x128xf32> to vector<1x32xf32>
    %327 = arith.mulf %324, %311 : vector<1x32xf32>
    %328 = arith.mulf %323, %325 : vector<1x32xf32>
    %329 = arith.addf %327, %328 : vector<1x32xf32>
    %330 = math.tanh %329 : vector<1x32xf32>
    %331 = arith.mulf %326, %330 : vector<1x32xf32>
    %332 = tpu.concatenate %277, %295, %313, %331 in 0 : vector<1x32xf32>, vector<1x32xf32>, vector<1x32xf32>, vector<1x32xf32> -> vector<4x32xf32>
    %c0_73 = arith.constant 0 : index
    %c0_74 = arith.constant 0 : index
    %333 = vector.load %arg4[%c0_73, %c0_74] : memref<32x32xf32, #tpu.memory_space<vmem>>, vector<32x32xf32>
    %cst_75 = arith.constant dense<0.000000e+00> : vector<4x32xf32>
    %334 = tpu.matmul %332, %333, %cst_75 {dimension_numbers = #tpu.dot_dimension_numbers<[1], [0], [0], [1], [0, 0, 1, 1], [], []>} : vector<4x32xf32>, vector<32x32xf32>, vector<4x32xf32> -> vector<4x32xf32>
    %c0_76 = arith.constant 0 : index
    %c0_77 = arith.constant 0 : index
    %335 = vector.load %arg5[%c0_76, %c0_77] : memref<32x33xf32, #tpu.memory_space<vmem>>, vector<32x33xf32>
    %cst_78 = arith.constant dense<0.000000e+00> : vector<4x33xf32>
    %336 = tpu.matmul %332, %335, %cst_78 {dimension_numbers = #tpu.dot_dimension_numbers<[1], [0], [0], [1], [0, 0, 1, 1], [], []>} : vector<4x32xf32>, vector<32x33xf32>, vector<4x33xf32> -> vector<4x33xf32>
    %cst_79 = arith.constant dense<0xFF800000> : vector<32xf32>
    %337 = vector.multi_reduction <maximumf>, %334, %cst_79 [0] : vector<4x32xf32> to vector<32xf32>
    %338 = vector.shape_cast %337 : vector<32xf32> to vector<1x32xf32>
    %339 = vector.broadcast %338 : vector<1x32xf32> to vector<4x32xf32>
    %340 = arith.subf %334, %339 : vector<4x32xf32>
    %341 = math.exp %340 : vector<4x32xf32>
    %cst_80 = arith.constant dense<0.000000e+00> : vector<32xf32>
    %342 = vector.multi_reduction <add>, %341, %cst_80 [0] : vector<4x32xf32> to vector<32xf32>
    %343 = vector.shape_cast %342 : vector<32xf32> to vector<1x32xf32>
    %344 = math.log %343 : vector<1x32xf32>
    %345 = vector.broadcast %344 : vector<1x32xf32> to vector<4x32xf32>
    %346 = arith.subf %340, %345 : vector<4x32xf32>
    %c0_81 = arith.constant 0 : index
    %c0_82 = arith.constant 0 : index
    %347 = vector.load %arg6[%c0_81, %c0_82] : memref<4x32xf32, #tpu.memory_space<vmem>>, vector<4x32xf32>
    tpu.vector_store %arg6[%c0_81, %c0_82], %346 {strides = array<i32>} : memref<4x32xf32, #tpu.memory_space<vmem>>, vector<4x32xf32>,
    %cst_83 = arith.constant dense<0xFF800000> : vector<33xf32>
    %348 = vector.multi_reduction <maximumf>, %336, %cst_83 [0] : vector<4x33xf32> to vector<33xf32>
    %349 = vector.shape_cast %348 : vector<33xf32> to vector<1x33xf32>
    %350 = vector.broadcast %349 : vector<1x33xf32> to vector<4x33xf32>
    %351 = arith.subf %336, %350 : vector<4x33xf32>
    %352 = math.exp %351 : vector<4x33xf32>
    %cst_84 = arith.constant dense<0.000000e+00> : vector<33xf32>
    %353 = vector.multi_reduction <add>, %352, %cst_84 [0] : vector<4x33xf32> to vector<33xf32>
    %354 = vector.shape_cast %353 : vector<33xf32> to vector<1x33xf32>
    %355 = math.log %354 : vector<1x33xf32>
    %356 = vector.broadcast %355 : vector<1x33xf32> to vector<4x33xf32>
    %357 = arith.subf %351, %356 : vector<4x33xf32>
    %c0_85 = arith.constant 0 : index
    %c0_86 = arith.constant 0 : index
    %358 = vector.load %arg7[%c0_85, %c0_86] : memref<4x33xf32, #tpu.memory_space<vmem>>, vector<4x33xf32>
    tpu.vector_store %arg7[%c0_85, %c0_86], %357 {strides = array<i32>} : memref<4x33xf32, #tpu.memory_space<vmem>>, vector<4x33xf32>,
    return
  }
}

</mosaic_0001>

<bundles_post_ra>
// kernel: tpu_custom_call.1
= control target key start
LH: loop header
LB: loop body
LE: loop exit
PB: predicated region body
PF: predicated region fallthrough
CT: control target
= control target key end

     0   :  { %13 = vsyncpa [#allocation3], 0  ;;  %s2448_s0 = inlined_call_operand.hbm [shape: f32[4,32], index: 0, kind: input, shape index: {}]   ;;  %s2449_s1 = inlined_call_operand.vmem [shape: f32[2], index: 1, kind: input, shape index: {}]   ;;  %s2450_s2 = inlined_call_operand.hbm [shape: f32[32,128], index: 2, kind: input, shape index: {}]   ;;  %s2451_s3 = inlined_call_operand.hbm [shape: f32[32,128], index: 3, kind: input, shape index: {}]   ;;  %s2452_s4 = inlined_call_operand.hbm [shape: f32[32,32], index: 4, kind: input, shape index: {}]   ;;  %s2453_s5 = inlined_call_operand.hbm [shape: f32[32,33], index: 5, kind: input, shape index: {}]   ;;  %s2454_s6 = inlined_call_operand.hbm [shape: f32[4,32], index: 6, kind: output, shape index: {0}]   ;;  %s2455_s7 = inlined_call_operand.hbm [shape: f32[4,33], index: 7, kind: output, shape index: {1}]  }
   0x1   :  { %14 = vsyncpa [#allocation5], 0 }
   0x2   :  { %15 = vsyncpa [#allocation8], 0 }
   0x3   :  { %16 = vsyncpa [#allocation11], 0 }
   0x4   :  { %17 = vsyncpa [#allocation4], 0 }
   0x5   :  { %18 = vsyncpa [#allocation15], 0  ;;  %s2118_s24 = smov [#allocation7]  }
   0x6   :  { %s44_s25 = sshll.u32 %s2118_s24, 4  ;;  %s45_s25 = int_to_ptr.vmem [resolvable:$true] %s44_s25 }
   0x7   :  { %s1962_s26 = scalar_lea.vmem %s45_s25, 512  ;;  %p1967_p1 = scmp.lt.s32.totalorder %s45_s25, %s45_s25 }
   0x8   :  { %p1963_p0 = scmp.ne.s32.totalorder %s45_s25, %s1962_s26  ;;  %p1968_p2 = scmp.lt.s32.totalorder %s1962_s26, %s1962_s26 }
   0xa   :  { %p1969_p3 = por %p1968_p2, %p1967_p1 }
   0xc   :  { %p1970_p4 = pnand %p1969_p3, %p1963_p0 }
   0xe   :  { %1973 = shalt.err (!%p1970_p4)
}
   0xf   :  { %s2119_s27 = smov 128   ;;  %s2120_s28 = smov 8  }
  0x10   :  { %50 = dma.hbm_to_vmem [thread:$0]  %s2450_s2, 512, %s45_s25, [#allocation8], %s2119_s27, %s2119_s27, %s2120_s28  }
  0x11   :  { %s2121_s8 = smov [#allocation10]   ;;  %s2122_s10 = smov [#allocation2]  }
  0x12   :  { %s68_s9 = sshll.u32 %s2121_s8, 4  ;;  %s25_s11 = sshll.u32 %s2122_s10, 4  ;;  %s69_s9 = int_to_ptr.vmem [resolvable:$true] %s68_s9  ;;  %s26_s11 = int_to_ptr.vmem [resolvable:$true] %s25_s11 }
  0x13   :  { %s1982_s12 = scalar_lea.vmem %s69_s9, 512  ;;  %p1987_p6 = scmp.lt.s32.totalorder %s69_s9, %s69_s9 }
  0x14   :  { %p1983_p5 = scmp.ne.s32.totalorder %s69_s9, %s1982_s12  ;;  %p1988_p7 = scmp.lt.s32.totalorder %s1982_s12, %s1982_s12 }
  0x16   :  { %p1989_p8 = por %p1988_p7, %p1987_p6 }
  0x18   :  { %p1990_p9 = pnand %p1989_p8, %p1983_p5 }
  0x1a   :  { %1993 = shalt.err (!%p1990_p9)
}
  0x1b   :  { %74 = dma.hbm_to_vmem [thread:$0]  %s2452_s4, 512, %s69_s9, [#allocation11], %s2119_s27, %s2119_s27, %s2120_s28  }
  0x1c   :  { %s35_s16 = sshll.u32 %s2449_s1, 4  ;;  %s2002_s17 = scalar_lea.vmem %s26_s11, 64  ;;  %s36_s16 = int_to_ptr.vmem [resolvable:$true] %s35_s16 }
  0x1d   :  { %p2003_p10 = scmp.ne.s32.totalorder %s26_s11, %s2002_s17  ;;  %p2007_p11 = scmp.lt.s32.totalorder %s26_s11, %s26_s11 }
  0x1e   :  { %p2008_p12 = scmp.lt.s32.totalorder %s2002_s17, %s2002_s17 }
  0x20   :  { %p2009_p13 = por %p2008_p12, %p2007_p11 }
  0x22   :  { %p2010_p0 = pnand %p2009_p13, %p2003_p10 }
  0x24   :  { %2013 = shalt.err (!%p2010_p0)
}
  0x25   :  { %28 = dma.hbm_to_vmem [thread:$0]  %s2448_s0, 64, %s26_s11, [#allocation3]  }
  0x26   :  { %s2014_s20 = scalar_lea.vmem %s36_s16, 16  ;;  %p2019_p2 = scmp.lt.s32.totalorder %s36_s16, %s36_s16 }
  0x27   :  { %p2015_p1 = scmp.ne.s32.totalorder %s36_s16, %s2014_s20  ;;  %p2020_p3 = scmp.lt.s32.totalorder %s2014_s20, %s2014_s20 }
  0x29   :  { %p2021_p4 = por %p2020_p3, %p2019_p2 }
  0x2b   :  { %p2022_p5 = pnand %p2021_p4, %p2015_p1 }
  0x2d   :  { %2025 = shalt.err (!%p2022_p5)
}
  0x2e   :  { %s2123_s1 = smov [#allocation6]   ;;  %s2124_s4 = smov [#allocation9]  }
  0x2f   :  { %38 = dma.vmem_to_smem %s36_s16, 16, %s2123_s1, [#allocation5]  }
  0x30   :  { %s56_s21 = sshll.u32 %s2124_s4, 4  ;;  %s2125_s22 = smov [#allocation12]   ;;  %s57_s21 = int_to_ptr.vmem [resolvable:$true] %s56_s21 }
  0x31   :  { %s80_s23 = sshll.u32 %s2125_s22, 4  ;;  %s2034_s24 = scalar_lea.vmem %s57_s21, 512  ;;  %s81_s23 = int_to_ptr.vmem [resolvable:$true] %s80_s23 }
  0x32   :  { %p2035_p6 = scmp.ne.s32.totalorder %s57_s21, %s2034_s24  ;;  %p2039_p7 = scmp.lt.s32.totalorder %s57_s21, %s57_s21 }
  0x33   :  { %p2040_p8 = scmp.lt.s32.totalorder %s2034_s24, %s2034_s24 }
  0x35   :  { %p2041_p9 = por %p2040_p8, %p2039_p7 }
  0x37   :  { %p2042_p10 = pnand %p2041_p9, %p2035_p6 }
  0x39   :  { %2045 = shalt.err (!%p2042_p10)
}
  0x3a   :  { %62 = dma.hbm_to_vmem [thread:$0]  %s2451_s3, 512, %s57_s21, [#allocation8], %s2119_s27, %s2119_s27, %s2120_s28  }
  0x3b   :  { %s2054_s26 = scalar_lea.vmem %s81_s23, 512  ;;  %p2059_p12 = scmp.lt.s32.totalorder %s81_s23, %s81_s23 }
  0x3c   :  { %p2055_p11 = scmp.ne.s32.totalorder %s81_s23, %s2054_s26  ;;  %p2060_p13 = scmp.lt.s32.totalorder %s2054_s26, %s2054_s26 }
  0x3e   :  { %p2061_p0 = por %p2060_p13, %p2059_p12 }
  0x40   :  { %p2062_p1 = pnand %p2061_p0, %p2055_p11 }
  0x42   :  { %2065 = shalt.err (!%p2062_p1)
}
  0x43   :  { %86 = dma.hbm_to_vmem [thread:$0]  %s2453_s5, 512, %s81_s23, [#allocation11], %s2119_s27, %s2119_s27, %s2120_s28  }
  0x44   :  { %2106 = dma.done.wait [#allocation3], 64  }
  0x45   :  { %2107 = vsyncadd [#allocation3], 4294967232 }
  0x46   :  { %2108 = dma.done.wait [#allocation5], 16  }
  0x47   :  { %2109 = vsyncadd [#allocation5], 4294967280 }
  0x48   :  { %2110 = dma.done.wait [#allocation8], 1024  }
  0x49   :  { %2111 = vsyncadd [#allocation8], 4294966272 }
  0x4a   :  { %2112 = dma.done.wait [#allocation11], 1024  }
  0x4b   :  { %2113 = vsyncadd [#allocation11], 4294966272 }
  0x4c   :  { %105 = sfence }
  0x4d   :  { %v116_v0 = vld [vmem:[#allocation2] sm:$0xf]  ;;  %vm117_vm0 = vcmask 257024   ;;  %s106_s11 = sld [smem:[#allocation6]]  ;;  %vm2127_vm1 = vmmov 0   ;;  %vm274_vm2 = vcmask 261120  }
  0x4e   :  { %v118_v1 = vsel %vm117_vm0, %v116_v0, 0.0  ;;  %v131_v2 = vmul.f32 %v116_v0, %v116_v0  ;;  %s2212_s0 = sld [smem:[#allocation6 + $0x1]]  ;;  %vm766_vm3 = vcmask 1040384   ;;  %vm768_vm4 = vcmask 1041408  }
  0x4f   :  { %119 = vadd.xlane.f32.xlu0 %v118_v1  ;;  %vm770_vm5 = vcmask 1042432   ;;  %vm1555_vm6 = vcmask 265216  }
  0x50   :  { %v132_v3 = vsel %vm117_vm0, %v131_v2, 0.0 }
  0x53   :  { %133 = vadd.xlane.f32.xlu0 %v132_v3  ;;  %v2204_v23 = vstv %s106_s11 }
  0xd8   :  { %v120_v4 = vpop.xlane.xlu0 %119 }
  0xd9   :  { %v121_v5 = vrot.slane %v120_v4, 4 }
  0xdb   :  { %v122_v6 = vadd.f32 %v121_v5, %v120_v4 }
  0xdc   :  { %v134_v7 = vpop.xlane.xlu0 %133 }
  0xdd   :  { %v123_v8 = vrot.slane %v122_v6, 2  ;;  %v135_v9 = vrot.slane %v134_v7, 4 }
  0xdf   :  { %v136_v10 = vadd.f32 %v135_v9, %v134_v7  ;;  %v124_v11 = vadd.f32 %v123_v8, %v122_v6 }
  0xe1   :  { %v137_v12 = vrot.slane %v136_v10, 2  ;;  %v125_v13 = vrot.slane %v124_v11, 1 }
  0xe3   :  { %v126_v14 = vadd.f32 %v125_v13, %v124_v11  ;;  %v138_v15 = vadd.f32 %v137_v12, %v136_v10  ;;  %v234_v10 = vstv %s2212_s0 }
  0xe5   :  { %1804 = vpush %v126_v14  ;;  %v139_v16 = vrot.slane %v138_v15, 1 }
  0xe7   :  { %v140_v17 = vadd.f32 %v139_v16, %v138_v15 }
  0xe9   :  { %1806 = vpush %v140_v17  ;;  %v2224_v17 = vld [vmem:[#allocation9 + $0x18] sm:$0xff] }
 0x116   :  { %s1805_s3 = spop %1804 }
 0x117   :  { %s130_s5 = smul.f32 0.0078125, %s1805_s3 }
 0x119   :  { %s145_s27 = smul.f32 %s130_s5, %s130_s5  ;;  %v147_v20 = vstv %s130_s5 }
 0x11a   :  { %s1807_s28 = spop %1806  ;;  %v148_v21 = vsub.f32 %v116_v0, %v147_v20  ;;  %v2230_v20 = vld [vmem:[#allocation9 + $0x10] sm:$0xff] }
 0x11b   :  { %s144_s8 = smul.f32 0.0078125, %s1807_s28 }
 0x11d   :  { %s146_s9 = ssub.f32 %s144_s8, %s145_s27 }
 0x11f   :  { %s149_s10 = sadd.f32 1e-05, %s146_s9  ;;  %s2128_s9 = smov 64  }
 0x121   :  { %v150_v18 = vstv %s149_s10  ;;  %s2129_s10 = smov 32  }
 0x122   :  { %1866 = vrsqrt.f32 %v150_v18  ;;  %v2226_v18 = vld [vmem:[#allocation7 + $0x18] sm:$0xff] }
 0x12f   :  { %v1867_v19 = vpop.eup %1866 }
 0x130   :  { %1808 = vpush %v1867_v19  ;;  %v2126_v19 = vmov 0.0  }
 0x131   :  { %1694 = vmatprep.subr.mxu1 %v2126_v19  ;;  %1683 = vmatprep.subr.mxu0 %v2126_v19 }
 0x132   :  { %1695 = vmatpush3.msra.mxu1 %v2224_v17  ;;  %1684 = vmatpush3.msra.mxu0 %v2226_v18 }
 0x133   :  { %1696 = vmatprep.subr.mxu1 %v2126_v19  ;;  %1685 = vmatprep.subr.mxu0 %v2126_v19 }
 0x134   :  { %1697 = vmatpush3.msra.mxu1 %v2230_v20  ;;  %1702 = vmatprep.mubr.msk.f32.mxu1 %vm2127_vm1, %v2126_v19 }
 0x135   :  { %1698 = vmatprep.subr.mxu1 %v2126_v19  ;;  %1691 = vmatprep.mubr.msk.f32.mxu0 %vm2127_vm1, %v2126_v19 }
 0x161   :  { %s1809_s12 = spop %1808 }
 0x162   :  { %v153_v22 = vstv %s1809_s12 }
 0x163   :  { %v154_v24 = vmul.f32 %v153_v22, %v148_v21  ;;  %v2232_v21 = vld [vmem:[#allocation7 + $0x10] sm:$0xff]  ;;  %v2238_v22 = vld [vmem:[#allocation9 + $0x8] sm:$0xff] }
 0x164   :  { %1686 = vmatpush3.msra.mxu0 %v2232_v21  ;;  %1699 = vmatpush3.msra.mxu1 %v2238_v22 }
 0x165   :  { %v156_v25 = vmul.f32 %v2204_v23, %v154_v24  ;;  %1687 = vmatprep.subr.mxu0 %v2126_v19  ;;  %1700 = vmatprep.subr.mxu1 %v2126_v19 }
 0x167   :  { %v157_v26 = vmax.f32 %v156_v25, 0.0 }
 0x169   :  { %v158_v27 = vsel %vm117_vm0, %v157_v26, 0.0  ;;  %v171_v28 = vmul.f32 %v157_v26, %v157_v26 }
 0x16a   :  { %159 = vadd.xlane.f32.xlu1 %v158_v27 }
 0x16b   :  { %v172_v29 = vsel %vm117_vm0, %v171_v28, 0.0 }
 0x16e   :  { %173 = vadd.xlane.f32.xlu1 %v172_v29 }
 0x1f3   :  { %v160_v30 = vpop.xlane.xlu1 %159 }
 0x1f4   :  { %v161_v31 = vrot.slane %v160_v30, 4 }
 0x1f6   :  { %v162_v32 = vadd.f32 %v161_v31, %v160_v30 }
 0x1f7   :  { %v174_v33 = vpop.xlane.xlu1 %173 }
 0x1f8   :  { %v163_v34 = vrot.slane %v162_v32, 2  ;;  %v175_v35 = vrot.slane %v174_v33, 4 }
 0x1fa   :  { %v176_v36 = vadd.f32 %v175_v35, %v174_v33  ;;  %v164_v37 = vadd.f32 %v163_v34, %v162_v32  ;;  %v2246_v33 = vld [vmem:[#allocation7 + $0x8] sm:$0xff]  ;;  %v2248_v34 = vld [vmem:[#allocation9] sm:$0xff] }
 0x1fb   :  { %1688 = vmatpush3.msra.mxu0 %v2246_v33  ;;  %1701 = vmatpush3.msra.mxu1 %v2248_v34 }
 0x1fc   :  { %v177_v38 = vrot.slane %v176_v36, 2  ;;  %v165_v39 = vrot.slane %v164_v37, 1  ;;  %1689 = vmatprep.subr.mxu0 %v2126_v19  ;;  %1703 = vmatmul.mubr.f32.vlgmr.msra.gmra.mxu1 %v2126_v19 }
 0x1fd   :  { %1716 = vmatprep.subr.mxu1 %v2126_v19  ;;  %1724 = vmatprep.mubr.msk.f32.mxu1 %vm2127_vm1, %v2126_v19 }
 0x1fe   :  { %v166_v40 = vadd.f32 %v165_v39, %v164_v37  ;;  %v178_v41 = vadd.f32 %v177_v38, %v176_v36  ;;  %v2255_v37 = vld [vmem:[#allocation7] sm:$0xff]  ;;  %1717 = vmatpush3.msra.mxu1 %v2224_v17 }
 0x1ff   :  { %1690 = vmatpush3.msra.mxu0 %v2255_v37  ;;  %1718 = vmatprep.subr.mxu1 %v2126_v19 }
 0x200   :  { %1810 = vpush %v166_v40  ;;  %v179_v42 = vrot.slane %v178_v41, 1  ;;  %1705 = vmatprep.subr.mxu0 %v2126_v19  ;;  %1719 = vmatpush3.msra.mxu1 %v2230_v20 }
 0x201   :  { %1720 = vmatprep.subr.mxu1 %v2126_v19 }
 0x202   :  { %v180_v43 = vadd.f32 %v179_v42, %v178_v41  ;;  %1721 = vmatpush3.msra.mxu1 %v2238_v22 }
 0x203   :  { %1722 = vmatprep.subr.mxu1 %v2126_v19 }
 0x204   :  { %1812 = vpush %v180_v43  ;;  %1723 = vmatpush3.msra.mxu1 %v2248_v34 }
 0x205   :  { %1738 = vmatprep.subr.mxu1 %v2126_v19 }
 0x231   :  { %s1811_s13 = spop %1810 }
 0x232   :  { %s170_s14 = smul.f32 0.0078125, %s1811_s13 }
 0x234   :  { %s185_s2 = smul.f32 %s170_s14, %s170_s14  ;;  %v187_v46 = vstv %s170_s14 }
 0x235   :  { %s1813_s15 = spop %1812  ;;  %v188_v47 = vsub.f32 %v157_v26, %v187_v46 }
 0x236   :  { %s184_s16 = smul.f32 0.0078125, %s1813_s15 }
 0x238   :  { %s186_s17 = ssub.f32 %s184_s16, %s185_s2 }
 0x23a   :  { %s189_s18 = sadd.f32 1e-05, %s186_s17 }
 0x23c   :  { %v190_v44 = vstv %s189_s18 }
 0x23d   :  { %1868 = vrsqrt.f32 %v190_v44 }
 0x24a   :  { %v1869_v45 = vpop.eup %1868 }
 0x24b   :  { %1814 = vpush %v1869_v45 }
 0x27c   :  { %s1815_s19 = spop %1814 }
 0x27d   :  { %v193_v48 = vstv %s1815_s19 }
 0x27e   :  { %v194_v49 = vmul.f32 %v193_v48, %v188_v47 }
 0x280   :  { %v195_v50 = vmul.f32 %v194_v49, %v2204_v23 }
 0x282   :  { %v196_v51 = vmax.f32 %v195_v50, 0.0 }
 0x284   :  { %v197_v52 = vsel %vm117_vm0, %v196_v51, 0.0  ;;  %v210_v53 = vmul.f32 %v196_v51, %v196_v51 }
 0x285   :  { %198 = vadd.xlane.f32.xlu0 %v197_v52 }
 0x286   :  { %v211_v54 = vsel %vm117_vm0, %v210_v53, 0.0 }
 0x287   :  { %212 = vadd.xlane.f32.xlu1 %v211_v54 }
 0x2bc   :  { %v2285_v47 = vpop.f32.mrf.mxu1 }
 0x2be   :  { %v1704_v48 = vpop.f32.mrf.mxu1 }
 0x30e   :  { %v199_v55 = vpop.xlane.xlu0 %198 }
 0x30f   :  { %v200_v56 = vrot.slane %v199_v55, 4 }
 0x310   :  { %v213_v57 = vpop.xlane.xlu1 %212 }
 0x311   :  { %v201_v58 = vadd.f32 %v200_v56, %v199_v55  ;;  %v214_v59 = vrot.slane %v213_v57, 4 }
 0x313   :  { %v202_v60 = vrot.slane %v201_v58, 2  ;;  %v215_v61 = vadd.f32 %v214_v59, %v213_v57 }
 0x315   :  { %v216_v62 = vrot.slane %v215_v61, 2  ;;  %v203_v63 = vadd.f32 %v202_v60, %v201_v58 }
 0x317   :  { %v204_v0 = vrot.slane %v203_v63, 1  ;;  %v217_v1 = vadd.f32 %v216_v62, %v215_v61 }
 0x319   :  { %v205_v2 = vadd.f32 %v204_v0, %v203_v63  ;;  %v218_v3 = vrot.slane %v217_v1, 1 }
 0x31b   :  { %1816 = vpush %v205_v2  ;;  %v219_v4 = vadd.f32 %v218_v3, %v217_v1 }
 0x31d   :  { %1818 = vpush %v219_v4 }
 0x34c   :  { %s1817_s20 = spop %1816 }
 0x34d   :  { %s209_s1 = smul.f32 0.0078125, %s1817_s20 }
 0x34e   :  { %s1819_s4 = spop %1818 }
 0x34f   :  { %s224_s21 = smul.f32 %s209_s1, %s209_s1  ;;  %v226_v7 = vstv %s209_s1 }
 0x350   :  { %s223_s22 = smul.f32 0.0078125, %s1819_s4  ;;  %v227_v8 = vsub.f32 %v196_v51, %v226_v7 }
 0x352   :  { %s225_s23 = ssub.f32 %s223_s22, %s224_s21 }
 0x354   :  { %s228_s24 = sadd.f32 1e-05, %s225_s23 }
 0x356   :  { %v229_v5 = vstv %s228_s24 }
 0x357   :  { %1870 = vrsqrt.f32 %v229_v5 }
 0x364   :  { %v1871_v6 = vpop.eup %1870 }
 0x365   :  { %1820 = vpush %v1871_v6 }
 0x396   :  { %s1821_s25 = spop %1820 }
 0x397   :  { %v232_v9 = vstv %s1821_s25 }
 0x398   :  { %v233_v11 = vmul.f32 %v232_v9, %v227_v8 }
 0x39a   :  { %v235_v12 = vmul.f32 %v234_v10, %v233_v11 }
 0x39c   :  { %v2217_v13 = vmax.f32 %v235_v12, 0.0 }
 0x39e   :  { %v237_v14 = vsel %vm117_vm0, %v2217_v13, 0.0  ;;  %v250_v15 = vmul.f32 %v2217_v13, %v2217_v13 }
 0x39f   :  { %238 = vadd.xlane.f32.xlu0 %v237_v14 }
 0x3a0   :  { %v251_v16 = vsel %vm117_vm0, %v250_v15, 0.0 }
 0x3a1   :  { %252 = vadd.xlane.f32.xlu1 %v251_v16 }
 0x428   :  { %v239_v24 = vpop.xlane.xlu0 %238 }
 0x429   :  { %v240_v25 = vrot.slane %v239_v24, 4 }
 0x42a   :  { %v253_v26 = vpop.xlane.xlu1 %252 }
 0x42b   :  { %v241_v27 = vadd.f32 %v240_v25, %v239_v24  ;;  %v254_v28 = vrot.slane %v253_v26, 4 }
 0x42d   :  { %v242_v29 = vrot.slane %v241_v27, 2  ;;  %v255_v30 = vadd.f32 %v254_v28, %v253_v26 }
 0x42f   :  { %v256_v31 = vrot.slane %v255_v30, 2  ;;  %v243_v32 = vadd.f32 %v242_v29, %v241_v27 }
 0x431   :  { %v244_v35 = vrot.slane %v243_v32, 1  ;;  %v257_v36 = vadd.f32 %v256_v31, %v255_v30 }
 0x433   :  { %v245_v38 = vadd.f32 %v244_v35, %v243_v32  ;;  %v258_v39 = vrot.slane %v257_v36, 1 }
 0x435   :  { %1822 = vpush %v245_v38  ;;  %v259_v40 = vadd.f32 %v258_v39, %v257_v36 }
 0x437   :  { %1824 = vpush %v259_v40 }
 0x466   :  { %s1823_s26 = spop %1822 }
 0x467   :  { %s249_s29 = smul.f32 0.0078125, %s1823_s26 }
 0x468   :  { %s1825_s30 = spop %1824 }
 0x469   :  { %s264_s3 = smul.f32 %s249_s29, %s249_s29  ;;  %v266_v43 = vstv %s249_s29 }
 0x46a   :  { %s263_s5 = smul.f32 0.0078125, %s1825_s30  ;;  %v267_v44 = vsub.f32 %v2217_v13, %v266_v43 }
 0x46c   :  { %s265_s27 = ssub.f32 %s263_s5, %s264_s3 }
 0x46e   :  { %s268_s28 = sadd.f32 1e-05, %s265_s27 }
 0x470   :  { %v269_v41 = vstv %s268_s28 }
 0x471   :  { %1872 = vrsqrt.f32 %v269_v41 }
 0x47e   :  { %v1873_v42 = vpop.eup %1872 }
 0x47f   :  { %1826 = vpush %v1873_v42 }
 0x4b0   :  { %s1827_s8 = spop %1826 }
 0x4b1   :  { %v272_v45 = vstv %s1827_s8 }
 0x4b2   :  { %v273_v46 = vmul.f32 %v272_v45, %v267_v44 }
 0x4b4   :  { %1692 = vmatmul.mubr.msk.f32.vlgmr.msra.gmra.mxu0 %vm274_vm2, %v273_v46 }
 0x4b5   :  { %1706 = vmatpush3.msra.mxu0 %v2224_v17  ;;  %1713 = vmatprep.mubr.msk.f32.mxu0 %vm2127_vm1, %v2126_v19 }
 0x4b6   :  { %1707 = vmatprep.subr.mxu0 %v2126_v19 }
 0x4b7   :  { %1708 = vmatpush3.msra.mxu0 %v2230_v20 }
 0x4b8   :  { %1709 = vmatprep.subr.mxu0 %v2126_v19 }
 0x4b9   :  { %1710 = vmatpush3.msra.mxu0 %v2238_v22 }
 0x4ba   :  { %1711 = vmatprep.subr.mxu0 %v2126_v19 }
 0x4bb   :  { %1712 = vmatpush3.msra.mxu0 %v2248_v34 }
 0x4bc   :  { %1727 = vmatprep.subr.mxu0 %v2126_v19 }
 0x574   :  { %v2287_v49 = vpop.f32.mrf.mxu0 }
 0x575   :  { %v421_v50 = vadd.f32 %v2285_v47, %v2287_v49 }
 0x576   :  { %v1693_v51 = vpop.f32.mrf.mxu0 }
 0x577   :  { %1874 = vtanh.f32 %v421_v50  ;;  %v1611_v53 = vmul.f32 -1.442695, %v421_v50 }
 0x579   :  { %1876 = vpow2.f32 %v1611_v53 }
 0x584   :  { %v1875_v52 = vpop.eup %1874 }
 0x585   :  { %431 = vrot.lane.b32.xlu0 %v1875_v52, %s2128_s9 }
 0x586   :  { %v1877_v54 = vpop.eup %1876 }
 0x587   :  { %v425_v55 = vadd.f32 1.0, %v1877_v54 }
 0x589   :  { %1878 = vrcp.f32 %v425_v55 }
 0x596   :  { %v1879_v56 = vpop.eup %1878 }
 0x597   :  { %v429_v59 = vmul.f32 0.0, %v1879_v56 }
 0x5f7   :  { %v432_v57 = vpop.permute.xlu0 %431 }
 0x5f8   :  { %v434_v58 = vmul.f32 %v1879_v56, %v432_v57 }
 0x5fa   :  { %436 = vrot.lane.b32.xlu1 %v434_v58, %s2129_s10 }
 0x66c   :  { %v437_v60 = vpop.permute.xlu1 %436 }
 0x66d   :  { %v439_v61 = vadd.f32 %v437_v60, %v429_v59 }
 0x66f   :  { %1880 = vtanh.f32 %v439_v61  ;;  %v533_v14 = vrot.slane %v439_v61, 7 }
 0x67c   :  { %v1881_v62 = vpop.eup %1880 }
 0x67d   :  { %442 = vrot.lane.b32.xlu1 %v1881_v62, %s2128_s9 }
 0x6ef   :  { %v443_v63 = vpop.permute.xlu1 %442 }
 0x6f0   :  { %v2294_v0 = vmul.f32 %v1879_v56, %v443_v63 }
 0x6f2   :  { %447 = vrot.lane.b32.xlu1 %v2294_v0, %s2129_s10 }
 0x764   :  { %v448_v1 = vpop.permute.xlu1 %447 }
 0x765   :  { %1714 = vmatmul.mubr.msk.f32.vlgmr.msra.gmra.mxu0 %vm274_vm2, %v448_v1 }
 0x766   :  { %1728 = vmatpush3.msra.mxu0 %v2224_v17  ;;  %1735 = vmatprep.mubr.msk.f32.mxu0 %vm2127_vm1, %v2126_v19 }
 0x767   :  { %1729 = vmatprep.subr.mxu0 %v2126_v19 }
 0x768   :  { %1730 = vmatpush3.msra.mxu0 %v2230_v20 }
 0x769   :  { %1731 = vmatprep.subr.mxu0 %v2126_v19 }
 0x76a   :  { %1732 = vmatpush3.msra.mxu0 %v2238_v22 }
 0x76b   :  { %1733 = vmatprep.subr.mxu0 %v2126_v19 }
 0x76c   :  { %1734 = vmatpush3.msra.mxu0 %v2248_v34 }
 0x76d   :  { %1749 = vmatprep.subr.mxu0 %v2126_v19 }
 0x825   :  { %v517_v2 = vpop.f32.mrf.mxu0 }
 0x826   :  { %v522_v3 = vrot.slane %v517_v2, 7 }
 0x827   :  { %v1715_v4 = vpop.f32.mrf.mxu0 }
 0x828   :  { %v524_v5 = vadd.f32 %v522_v3, %v2287_v49 }
 0x82a   :  { %1882 = vtanh.f32 %v524_v5  ;;  %v1613_v7 = vmul.f32 -1.442695, %v524_v5 }
 0x82c   :  { %1884 = vpow2.f32 %v1613_v7 }
 0x837   :  { %v1883_v6 = vpop.eup %1882 }
 0x838   :  { %537 = vrot.lane.b32.xlu0 %v1883_v6, %s2128_s9 }
 0x839   :  { %v1885_v8 = vpop.eup %1884 }
 0x83a   :  { %v528_v9 = vadd.f32 1.0, %v1885_v8 }
 0x83c   :  { %1886 = vrcp.f32 %v528_v9 }
 0x849   :  { %v1887_v11 = vpop.eup %1886 }
 0x84a   :  { %v535_v15 = vmul.f32 %v1887_v11, %v533_v14 }
 0x8aa   :  { %v538_v12 = vpop.permute.xlu0 %537 }
 0x8ab   :  { %v540_v13 = vmul.f32 %v1887_v11, %v538_v12 }
 0x8ad   :  { %542 = vrot.lane.b32.xlu1 %v540_v13, %s2129_s10 }
 0x91f   :  { %v543_v16 = vpop.permute.xlu1 %542 }
 0x920   :  { %v545_v24 = vadd.f32 %v543_v16, %v535_v15 }
 0x922   :  { %1888 = vtanh.f32 %v545_v24 }
 0x92f   :  { %v1889_v25 = vpop.eup %1888 }
 0x930   :  { %548 = vrot.lane.b32.xlu0 %v1889_v25, %s2128_s9 }
 0x9a2   :  { %v549_v26 = vpop.permute.xlu0 %548 }
 0x9a3   :  { %v551_v27 = vmul.f32 %v1887_v11, %v549_v26 }
 0x9a5   :  { %v553_v28 = vrot.slane %v551_v27, 1  ;;  %v767_v48 = vsel %vm766_vm3, %v2294_v0, %v551_v27 }
 0x9a7   :  { %554 = vrot.lane.b32.xlu1 %v553_v28, %s2129_s10 }
 0xa19   :  { %v555_v29 = vpop.permute.xlu1 %554 }
 0xa1a   :  { %1725 = vmatmul.mubr.msk.f32.vlgmr.msra.gmra.mxu1 %vm274_vm2, %v555_v29 }
 0xa1b   :  { %1739 = vmatpush3.msra.mxu1 %v2226_v18  ;;  %1746 = vmatprep.mubr.msk.f32.mxu1 %vm2127_vm1, %v2126_v19 }
 0xa1c   :  { %1740 = vmatprep.subr.mxu1 %v2126_v19 }
 0xa1d   :  { %1741 = vmatpush3.msra.mxu1 %v2232_v21 }
 0xa1e   :  { %1742 = vmatprep.subr.mxu1 %v2126_v19 }
 0xa1f   :  { %1743 = vmatpush3.msra.mxu1 %v2246_v33 }
 0xa20   :  { %1744 = vmatprep.subr.mxu1 %v2126_v19 }
 0xa21   :  { %1745 = vmatpush3.msra.mxu1 %v2255_v37  ;;  %v640_v37 = vrot.slane %v545_v24, 7 }
 0xa22   :  { %1760 = vmatprep.subr.mxu1 %v2126_v19 }
 0xada   :  { %v624_v30 = vpop.f32.mrf.mxu1 }
 0xadb   :  { %v629_v31 = vrot.slane %v624_v30, 6 }
 0xadc   :  { %v1726_v18 = vpop.f32.mrf.mxu1 }
 0xadd   :  { %v631_v32 = vadd.f32 %v629_v31, %v2287_v49 }
 0xadf   :  { %1890 = vtanh.f32 %v631_v32  ;;  %v1615_v21 = vmul.f32 -1.442695, %v631_v32 }
 0xae1   :  { %1892 = vpow2.f32 %v1615_v21 }
 0xaec   :  { %v1891_v35 = vpop.eup %1890 }
 0xaed   :  { %644 = vrot.lane.b32.xlu0 %v1891_v35, %s2128_s9 }
 0xaee   :  { %v1893_v36 = vpop.eup %1892 }
 0xaef   :  { %v635_v38 = vadd.f32 1.0, %v1893_v36 }
 0xaf1   :  { %1894 = vrcp.f32 %v635_v38 }
 0xafe   :  { %v1895_v33 = vpop.eup %1894 }
 0xaff   :  { %v642_v41 = vmul.f32 %v1895_v33, %v640_v37 }
 0xb5f   :  { %v645_v39 = vpop.permute.xlu0 %644 }
 0xb60   :  { %v647_v40 = vmul.f32 %v1895_v33, %v645_v39 }
 0xb62   :  { %649 = vrot.lane.b32.xlu1 %v647_v40, %s2129_s10 }
 0xbd4   :  { %v650_v42 = vpop.permute.xlu1 %649 }
 0xbd5   :  { %v652_v43 = vadd.f32 %v650_v42, %v642_v41 }
 0xbd7   :  { %1896 = vtanh.f32 %v652_v43  ;;  %v747_v0 = vrot.slane %v652_v43, 7 }
 0xbe4   :  { %v1897_v44 = vpop.eup %1896 }
 0xbe5   :  { %655 = vrot.lane.b32.xlu0 %v1897_v44, %s2128_s9 }
 0xc57   :  { %v656_v45 = vpop.permute.xlu0 %655 }
 0xc58   :  { %v658_v46 = vmul.f32 %v1895_v33, %v656_v45 }
 0xc5a   :  { %v660_v50 = vrot.slane %v658_v46, 2  ;;  %v769_v51 = vsel %vm768_vm4, %v767_v48, %v658_v46 }
 0xc5c   :  { %661 = vrot.lane.b32.xlu1 %v660_v50, %s2129_s10 }
 0xcce   :  { %v662_v52 = vpop.permute.xlu1 %661 }
 0xccf   :  { %1736 = vmatmul.mubr.msk.f32.vlgmr.msra.gmra.mxu0 %vm274_vm2, %v662_v52 }
 0xcd0   :  { %1750 = vmatpush3.msra.mxu0 %v2224_v17  ;;  %1757 = vmatprep.mubr.msk.f32.mxu0 %vm2127_vm1, %v2126_v19 }
 0xcd1   :  { %1751 = vmatprep.subr.mxu0 %v2126_v19 }
 0xcd2   :  { %1752 = vmatpush3.msra.mxu0 %v2230_v20 }
 0xcd3   :  { %1753 = vmatprep.subr.mxu0 %v2126_v19 }
 0xcd4   :  { %1754 = vmatpush3.msra.mxu0 %v2238_v22 }
 0xcd5   :  { %1755 = vmatprep.subr.mxu0 %v2126_v19 }
 0xcd6   :  { %1756 = vmatpush3.msra.mxu0 %v2248_v34 }
 0xcd7   :  { %1771 = vmatprep.subr.mxu0 %v2126_v19 }
 0xd8f   :  { %v731_v53 = vpop.f32.mrf.mxu0 }
 0xd90   :  { %v736_v54 = vrot.slane %v731_v53, 5 }
 0xd91   :  { %v1737_v55 = vpop.f32.mrf.mxu0 }
 0xd92   :  { %v738_v56 = vadd.f32 %v736_v54, %v2287_v49 }
 0xd94   :  { %1898 = vtanh.f32 %v738_v56  ;;  %v1617_v58 = vmul.f32 -1.442695, %v738_v56 }
 0xd96   :  { %1900 = vpow2.f32 %v1617_v58 }
 0xda1   :  { %v1899_v57 = vpop.eup %1898 }
 0xda2   :  { %751 = vrot.lane.b32.xlu0 %v1899_v57, %s2128_s9 }
 0xda3   :  { %v1901_v59 = vpop.eup %1900 }
 0xda4   :  { %v742_v60 = vadd.f32 1.0, %v1901_v59 }
 0xda6   :  { %1902 = vrcp.f32 %v742_v60 }
 0xdb3   :  { %v1903_v61 = vpop.eup %1902 }
 0xdb4   :  { %v749_v1 = vmul.f32 %v1903_v61, %v747_v0 }
 0xe14   :  { %v752_v62 = vpop.permute.xlu0 %751 }
 0xe15   :  { %v754_v63 = vmul.f32 %v1903_v61, %v752_v62 }
 0xe17   :  { %756 = vrot.lane.b32.xlu1 %v754_v63, %s2129_s10 }
 0xe89   :  { %v757_v2 = vpop.permute.xlu1 %756 }
 0xe8a   :  { %v759_v3 = vadd.f32 %v757_v2, %v749_v1 }
 0xe8c   :  { %1904 = vtanh.f32 %v759_v3 }
 0xe99   :  { %v1905_v49 = vpop.eup %1904 }
 0xe9a   :  { %762 = vrot.lane.b32.xlu0 %v1905_v49, %s2128_s9 }
 0xf0c   :  { %v763_v4 = vpop.permute.xlu0 %762 }
 0xf0d   :  { %v765_v5 = vmul.f32 %v1903_v61, %v763_v4 }
 0xf0f   :  { %v771_v6 = vsel %vm770_vm5, %v769_v51, %v765_v5 }
 0xf10   :  { %773 = vrot.lane.b32.xlu1 %v771_v6, %s2129_s10  ;;  %v789_v7 = vmul.f32 %v771_v6, %v771_v6 }
 0xf12   :  { %791 = vrot.lane.b32.xlu0 %v789_v7, %s2129_s10 }
 0xf82   :  { %v774_v8 = vpop.permute.xlu1 %773 }
 0xf83   :  { %v776_v9 = vsel %vm117_vm0, %v774_v8, 0.0 }
 0xf84   :  { %777 = vadd.xlane.f32.xlu1 %v776_v9  ;;  %v792_v11 = vpop.permute.xlu0 %791 }
 0xf85   :  { %v794_v12 = vsel %vm117_vm0, %v792_v11, 0.0 }
 0xf86   :  { %795 = vadd.xlane.f32.xlu0 %v794_v12 }
0x100d   :  { %v778_v13 = vpop.xlane.xlu1 %777 }
0x100e   :  { %v779_v14 = vrot.slane %v778_v13, 4 }
0x100f   :  { %v796_v15 = vpop.xlane.xlu0 %795 }
0x1010   :  { %v780_v16 = vadd.f32 %v779_v14, %v778_v13  ;;  %v797_v24 = vrot.slane %v796_v15, 4 }
0x1012   :  { %v781_v25 = vrot.slane %v780_v16, 2  ;;  %v798_v26 = vadd.f32 %v797_v24, %v796_v15 }
0x1014   :  { %v799_v27 = vrot.slane %v798_v26, 2  ;;  %v782_v28 = vadd.f32 %v781_v25, %v780_v16 }
0x1016   :  { %v783_v29 = vrot.slane %v782_v28, 1  ;;  %v800_v30 = vadd.f32 %v799_v27, %v798_v26 }
0x1018   :  { %v784_v31 = vadd.f32 %v783_v29, %v782_v28  ;;  %v801_v18 = vrot.slane %v800_v30, 1 }
0x101a   :  { %1828 = vpush %v784_v31  ;;  %v802_v32 = vadd.f32 %v801_v18, %v800_v30 }
0x101c   :  { %1830 = vpush %v802_v32 }
0x104b   :  { %s1829_s11 = spop %1828 }
0x104c   :  { %s788_s12 = smul.f32 0.0078125, %s1829_s11 }
0x104d   :  { %s1831_s13 = spop %1830 }
0x104e   :  { %s807_s14 = smul.f32 %s788_s12, %s788_s12  ;;  %v809_v36 = vstv %s788_s12 }
0x104f   :  { %s806_s2 = smul.f32 0.0078125, %s1831_s13  ;;  %v810_v38 = vsub.f32 %v771_v6, %v809_v36 }
0x1051   :  { %s808_s15 = ssub.f32 %s806_s2, %s807_s14 }
0x1053   :  { %s811_s16 = sadd.f32 1e-05, %s808_s15  ;;  %s2131_s15 = smov [#allocation14]  }
0x1055   :  { %v812_v35 = vstv %s811_s16  ;;  %s1593_s16 = sshll.u32 %s2131_s15, 4  ;;  %s1594_s16 = int_to_ptr.vmem [resolvable:$true] %s1593_s16 }
0x1056   :  { %1906 = vrsqrt.f32 %v812_v35 }
0x1063   :  { %v1907_v21 = vpop.eup %1906 }
0x1064   :  { %1832 = vpush %v1907_v21 }
0x1095   :  { %s1833_s17 = spop %1832 }
0x1096   :  { %v815_v33 = vstv %s1833_s17 }
0x1097   :  { %v816_v39 = vmul.f32 %v815_v33, %v810_v38 }
0x1099   :  { %v817_v40 = vmul.f32 %v816_v39, %v2204_v23 }
0x109b   :  { %v818_v37 = vmax.f32 %v817_v40, 0.0 }
0x109d   :  { %820 = vrot.lane.b32.xlu0 %v818_v37, %s2129_s10  ;;  %v836_v41 = vmul.f32 %v818_v37, %v818_v37 }
0x109f   :  { %838 = vrot.lane.b32.xlu1 %v836_v41, %s2129_s10 }
0x110f   :  { %v821_v42 = vpop.permute.xlu0 %820 }
0x1110   :  { %v823_v43 = vsel %vm117_vm0, %v821_v42, 0.0 }
0x1111   :  { %824 = vadd.xlane.f32.xlu1 %v823_v43  ;;  %v839_v44 = vpop.permute.xlu1 %838 }
0x1112   :  { %v841_v45 = vsel %vm117_vm0, %v839_v44, 0.0 }
0x1113   :  { %842 = vadd.xlane.f32.xlu0 %v841_v45 }
0x119a   :  { %v825_v46 = vpop.xlane.xlu1 %824 }
0x119b   :  { %v826_v48 = vrot.slane %v825_v46, 4 }
0x119c   :  { %v843_v50 = vpop.xlane.xlu0 %842 }
0x119d   :  { %v827_v51 = vadd.f32 %v826_v48, %v825_v46  ;;  %v844_v52 = vrot.slane %v843_v50, 4 }
0x119f   :  { %v828_v53 = vrot.slane %v827_v51, 2  ;;  %v845_v54 = vadd.f32 %v844_v52, %v843_v50 }
0x11a1   :  { %v846_v55 = vrot.slane %v845_v54, 2  ;;  %v829_v56 = vadd.f32 %v828_v53, %v827_v51 }
0x11a3   :  { %v830_v57 = vrot.slane %v829_v56, 1  ;;  %v847_v58 = vadd.f32 %v846_v55, %v845_v54 }
0x11a5   :  { %v831_v59 = vadd.f32 %v830_v57, %v829_v56  ;;  %v848_v60 = vrot.slane %v847_v58, 1 }
0x11a7   :  { %1834 = vpush %v831_v59  ;;  %v849_v61 = vadd.f32 %v848_v60, %v847_v58 }
0x11a9   :  { %1836 = vpush %v849_v61 }
0x11d8   :  { %s1835_s18 = spop %1834 }
0x11d9   :  { %s835_s19 = smul.f32 0.0078125, %s1835_s18 }
0x11da   :  { %s1837_s20 = spop %1836 }
0x11db   :  { %s854_s1 = smul.f32 %s835_s19, %s835_s19  ;;  %v856_v0 = vstv %s835_s19 }
0x11dc   :  { %s853_s4 = smul.f32 0.0078125, %s1837_s20  ;;  %v857_v1 = vsub.f32 %v818_v37, %v856_v0 }
0x11de   :  { %s855_s21 = ssub.f32 %s853_s4, %s854_s1 }
0x11e0   :  { %s858_s22 = sadd.f32 1e-05, %s855_s21 }
0x11e2   :  { %v859_v62 = vstv %s858_s22 }
0x11e3   :  { %1908 = vrsqrt.f32 %v859_v62 }
0x11f0   :  { %v1909_v63 = vpop.eup %1908 }
0x11f1   :  { %1838 = vpush %v1909_v63 }
0x1222   :  { %s1839_s23 = spop %1838 }
0x1223   :  { %v862_v2 = vstv %s1839_s23 }
0x1224   :  { %v863_v3 = vmul.f32 %v862_v2, %v857_v1 }
0x1226   :  { %v864_v49 = vmul.f32 %v863_v3, %v2204_v23 }
0x1228   :  { %v865_v4 = vmax.f32 %v864_v49, 0.0 }
0x122a   :  { %867 = vrot.lane.b32.xlu0 %v865_v4, %s2129_s10  ;;  %v883_v5 = vmul.f32 %v865_v4, %v865_v4 }
0x122c   :  { %885 = vrot.lane.b32.xlu1 %v883_v5, %s2129_s10 }
0x129c   :  { %v868_v6 = vpop.permute.xlu0 %867 }
0x129d   :  { %v870_v7 = vsel %vm117_vm0, %v868_v6, 0.0 }
0x129e   :  { %871 = vadd.xlane.f32.xlu1 %v870_v7  ;;  %v886_v8 = vpop.permute.xlu1 %885 }
0x129f   :  { %v888_v9 = vsel %vm117_vm0, %v886_v8, 0.0 }
0x12a0   :  { %889 = vadd.xlane.f32.xlu0 %v888_v9 }
0x1327   :  { %v872_v11 = vpop.xlane.xlu1 %871 }
0x1328   :  { %v873_v12 = vrot.slane %v872_v11, 4 }
0x1329   :  { %v890_v13 = vpop.xlane.xlu0 %889 }
0x132a   :  { %v874_v14 = vadd.f32 %v873_v12, %v872_v11  ;;  %v891_v15 = vrot.slane %v890_v13, 4 }
0x132c   :  { %v875_v23 = vrot.slane %v874_v14, 2  ;;  %v892_v16 = vadd.f32 %v891_v15, %v890_v13 }
0x132e   :  { %v893_v24 = vrot.slane %v892_v16, 2  ;;  %v876_v25 = vadd.f32 %v875_v23, %v874_v14 }
0x1330   :  { %v877_v26 = vrot.slane %v876_v25, 1  ;;  %v894_v27 = vadd.f32 %v893_v24, %v892_v16 }
0x1332   :  { %v878_v28 = vadd.f32 %v877_v26, %v876_v25  ;;  %v895_v29 = vrot.slane %v894_v27, 1 }
0x1334   :  { %1840 = vpush %v878_v28  ;;  %v896_v30 = vadd.f32 %v895_v29, %v894_v27 }
0x1336   :  { %1842 = vpush %v896_v30 }
0x1365   :  { %s1841_s24 = spop %1840 }
0x1366   :  { %s882_s25 = smul.f32 0.0078125, %s1841_s24 }
0x1367   :  { %s1843_s26 = spop %1842 }
0x1368   :  { %s901_s29 = smul.f32 %s882_s25, %s882_s25  ;;  %v903_v32 = vstv %s882_s25 }
0x1369   :  { %s900_s30 = smul.f32 0.0078125, %s1843_s26  ;;  %v904_v35 = vsub.f32 %v865_v4, %v903_v32 }
0x136b   :  { %s902_s3 = ssub.f32 %s900_s30, %s901_s29 }
0x136d   :  { %s905_s5 = sadd.f32 1e-05, %s902_s3 }
0x136f   :  { %v906_v31 = vstv %s905_s5 }
0x1370   :  { %1910 = vrsqrt.f32 %v906_v31 }
0x137d   :  { %v1911_v18 = vpop.eup %1910 }
0x137e   :  { %1844 = vpush %v1911_v18 }
0x13af   :  { %s1845_s27 = spop %1844 }
0x13b0   :  { %v909_v21 = vstv %s1845_s27 }
0x13b1   :  { %v910_v36 = vmul.f32 %v909_v21, %v904_v35 }
0x13b3   :  { %v911_v38 = vmul.f32 %v910_v36, %v234_v10 }
0x13b5   :  { %v912_v33 = vmax.f32 %v911_v38, 0.0 }
0x13b7   :  { %914 = vrot.lane.b32.xlu0 %v912_v33, %s2129_s10  ;;  %v930_v39 = vmul.f32 %v912_v33, %v912_v33 }
0x13b9   :  { %932 = vrot.lane.b32.xlu1 %v930_v39, %s2129_s10 }
0x1429   :  { %v915_v40 = vpop.permute.xlu0 %914 }
0x142a   :  { %v917_v37 = vsel %vm117_vm0, %v915_v40, 0.0 }
0x142b   :  { %918 = vadd.xlane.f32.xlu1 %v917_v37  ;;  %v933_v41 = vpop.permute.xlu1 %932 }
0x142c   :  { %v935_v42 = vsel %vm117_vm0, %v933_v41, 0.0 }
0x142d   :  { %936 = vadd.xlane.f32.xlu0 %v935_v42 }
0x14b4   :  { %v919_v43 = vpop.xlane.xlu1 %918 }
0x14b5   :  { %v920_v44 = vrot.slane %v919_v43, 4 }
0x14b6   :  { %v937_v45 = vpop.xlane.xlu0 %936 }
0x14b7   :  { %v921_v46 = vadd.f32 %v920_v44, %v919_v43  ;;  %v938_v48 = vrot.slane %v937_v45, 4 }
0x14b9   :  { %v922_v10 = vrot.slane %v921_v46, 2  ;;  %v939_v50 = vadd.f32 %v938_v48, %v937_v45 }
0x14bb   :  { %v940_v51 = vrot.slane %v939_v50, 2  ;;  %v923_v52 = vadd.f32 %v922_v10, %v921_v46 }
0x14bd   :  { %v924_v53 = vrot.slane %v923_v52, 1  ;;  %v941_v54 = vadd.f32 %v940_v51, %v939_v50 }
0x14bf   :  { %v925_v55 = vadd.f32 %v924_v53, %v923_v52  ;;  %v942_v56 = vrot.slane %v941_v54, 1 }
0x14c1   :  { %1846 = vpush %v925_v55  ;;  %v943_v57 = vadd.f32 %v942_v56, %v941_v54 }
0x14c3   :  { %1848 = vpush %v943_v57 }
0x14f2   :  { %s1847_s0 = spop %1846 }
0x14f3   :  { %s929_s28 = smul.f32 0.0078125, %s1847_s0 }
0x14f4   :  { %s1849_s8 = spop %1848 }
0x14f5   :  { %s948_s11 = smul.f32 %s929_s28, %s929_s28  ;;  %v950_v60 = vstv %s929_s28 }
0x14f6   :  { %s947_s12 = smul.f32 0.0078125, %s1849_s8  ;;  %v951_v61 = vsub.f32 %v912_v33, %v950_v60 }
0x14f8   :  { %s949_s13 = ssub.f32 %s947_s12, %s948_s11 }
0x14fa   :  { %s952_s14 = sadd.f32 1e-05, %s949_s13 }
0x14fc   :  { %v953_v58 = vstv %s952_s14 }
0x14fd   :  { %1912 = vrsqrt.f32 %v953_v58 }
0x150a   :  { %v1913_v59 = vpop.eup %1912 }
0x150b   :  { %1850 = vpush %v1913_v59 }
0x153c   :  { %s1851_s2 = spop %1850 }
0x153d   :  { %v956_v62 = vstv %s1851_s2 }
0x153e   :  { %v957_v63 = vmul.f32 %v956_v62, %v951_v61 }
0x1540   :  { %959 = vrot.lane.b32.xlu0 %v957_v63, %s2129_s10 }
0x15b2   :  { %v960_v0 = vpop.permute.xlu0 %959 }
0x15b3   :  { %1747 = vmatmul.mubr.msk.f32.vlgmr.msra.gmra.mxu1 %vm274_vm2, %v960_v0 }
0x15b4   :  { %1761 = vmatpush3.msra.mxu1 %v2224_v17  ;;  %1768 = vmatprep.mubr.msk.f32.mxu1 %vm2127_vm1, %v2126_v19 }
0x15b5   :  { %1762 = vmatprep.subr.mxu1 %v2126_v19 }
0x15b6   :  { %1763 = vmatpush3.msra.mxu1 %v2230_v20 }
0x15b7   :  { %1764 = vmatprep.subr.mxu1 %v2126_v19 }
0x15b8   :  { %1765 = vmatpush3.msra.mxu1 %v2238_v22 }
0x15b9   :  { %1766 = vmatprep.subr.mxu1 %v2126_v19 }
0x15ba   :  { %1767 = vmatpush3.msra.mxu1 %v2248_v34 }
0x15bb   :  { %1782 = vmatprep.subr.mxu1 %v2126_v19 }
0x1673   :  { %v2381_v1 = vpop.f32.mrf.mxu1 }
0x1674   :  { %v1033_v2 = vadd.f32 %v2381_v1, %v2285_v47 }
0x1675   :  { %v1748_v3 = vpop.f32.mrf.mxu1 }
0x1676   :  { %1914 = vtanh.f32 %v1033_v2  ;;  %v1619_v4 = vmul.f32 -1.442695, %v1033_v2 }
0x1678   :  { %1916 = vpow2.f32 %v1619_v4 }
0x1683   :  { %v1915_v49 = vpop.eup %1914 }
0x1684   :  { %1043 = vrot.lane.b32.xlu1 %v1915_v49, %s2128_s9 }
0x1685   :  { %v1917_v5 = vpop.eup %1916 }
0x1686   :  { %v1037_v6 = vadd.f32 1.0, %v1917_v5 }
0x1688   :  { %1918 = vrcp.f32 %v1037_v6 }
0x1695   :  { %v1919_v7 = vpop.eup %1918 }
0x1696   :  { %v1041_v11 = vmul.f32 0.0, %v1919_v7 }
0x16f6   :  { %v1044_v8 = vpop.permute.xlu1 %1043 }
0x16f7   :  { %v1046_v9 = vmul.f32 %v1919_v7, %v1044_v8 }
0x16f9   :  { %1048 = vrot.lane.b32.xlu1 %v1046_v9, %s2129_s10 }
0x176b   :  { %v1049_v12 = vpop.permute.xlu1 %1048 }
0x176c   :  { %v1051_v13 = vadd.f32 %v1049_v12, %v1041_v11 }
0x176e   :  { %1920 = vtanh.f32 %v1051_v13 }
0x177b   :  { %v1921_v47 = vpop.eup %1920 }
0x177c   :  { %1054 = vrot.lane.b32.xlu0 %v1921_v47, %s2128_s9  ;;  %v1383_v47 = vld [vmem:[#allocation10 + $0x10] sm:$0xff] }
0x17ee   :  { %v1055_v14 = vpop.permute.xlu0 %1054 }
0x17ef   :  { %v2388_v15 = vmul.f32 %v1919_v7, %v1055_v14  ;;  %v1462_v14 = vld [vmem:[#allocation12 + $0x10] sm:$0xff] }
0x17f1   :  { %1059 = vrot.lane.b32.xlu1 %v2388_v15, %s2129_s10 }
0x1863   :  { %v1060_v23 = vpop.permute.xlu1 %1059 }
0x1864   :  { %1758 = vmatmul.mubr.msk.f32.vlgmr.msra.gmra.mxu0 %vm274_vm2, %v1060_v23  ;;  %v1461_v23 = vld [vmem:[#allocation12 + $0x8] sm:$0xff] }
0x1865   :  { %1772 = vmatpush3.msra.mxu0 %v2224_v17  ;;  %1779 = vmatprep.mubr.msk.f32.mxu0 %vm2127_vm1, %v2126_v19 }
0x1866   :  { %1773 = vmatprep.subr.mxu0 %v2126_v19 }
0x1867   :  { %1774 = vmatpush3.msra.mxu0 %v2230_v20 }
0x1868   :  { %1775 = vmatprep.subr.mxu0 %v2126_v19 }
0x1869   :  { %1776 = vmatpush3.msra.mxu0 %v2238_v22 }
0x186a   :  { %1777 = vmatprep.subr.mxu0 %v2126_v19 }
0x186b   :  { %1778 = vmatpush3.msra.mxu0 %v2248_v34  ;;  %v1145_v34 = vrot.slane %v1051_v13, 7  ;;  %v1463_v13 = vld [vmem:[#allocation12 + $0x18] sm:$0xff] }
0x186c   :  { %1793 = vmatprep.subr.mxu0 %v2126_v19 }
0x1924   :  { %v1129_v16 = vpop.f32.mrf.mxu0 }
0x1925   :  { %v1134_v24 = vrot.slane %v1129_v16, 7  ;;  %v1381_v16 = vld [vmem:[#allocation10] sm:$0xff] }
0x1926   :  { %v1759_v17 = vpop.f32.mrf.mxu0 }
0x1927   :  { %v1136_v25 = vadd.f32 %v1134_v24, %v2381_v1  ;;  %v1460_v24 = vld [vmem:[#allocation12] sm:$0xff] }
0x1929   :  { %1922 = vtanh.f32 %v1136_v25  ;;  %v1621_v20 = vmul.f32 -1.442695, %v1136_v25 }
0x192b   :  { %1924 = vpow2.f32 %v1621_v20 }
0x1936   :  { %v1923_v26 = vpop.eup %1922 }
0x1937   :  { %1149 = vrot.lane.b32.xlu0 %v1923_v26, %s2128_s9 }
0x1938   :  { %v1925_v27 = vpop.eup %1924 }
0x1939   :  { %v1140_v28 = vadd.f32 1.0, %v1925_v27 }
0x193b   :  { %1926 = vrcp.f32 %v1140_v28 }
0x1948   :  { %v1927_v22 = vpop.eup %1926 }
0x1949   :  { %v1147_v31 = vmul.f32 %v1927_v22, %v1145_v34 }
0x19a9   :  { %v1150_v29 = vpop.permute.xlu0 %1149 }
0x19aa   :  { %v1152_v30 = vmul.f32 %v1927_v22, %v1150_v29 }
0x19ac   :  { %1154 = vrot.lane.b32.xlu1 %v1152_v30, %s2129_s10 }
0x1a1e   :  { %v1155_v18 = vpop.permute.xlu1 %1154 }
0x1a1f   :  { %v1157_v32 = vadd.f32 %v1155_v18, %v1147_v31 }
0x1a21   :  { %1928 = vtanh.f32 %v1157_v32  ;;  %v1252_v50 = vrot.slane %v1157_v32, 7 }
0x1a2e   :  { %v1929_v35 = vpop.eup %1928 }
0x1a2f   :  { %1160 = vrot.lane.b32.xlu0 %v1929_v35, %s2128_s9 }
0x1aa1   :  { %v1161_v21 = vpop.permute.xlu0 %1160 }
0x1aa2   :  { %v1163_v36 = vmul.f32 %v1927_v22, %v1161_v21 }
0x1aa4   :  { %v1165_v38 = vrot.slane %v1163_v36, 1  ;;  %v1378_v57 = vsel %vm766_vm3, %v2388_v15, %v1163_v36  ;;  %v1382_v15 = vld [vmem:[#allocation10 + $0x8] sm:$0xff] }
0x1aa6   :  { %1166 = vrot.lane.b32.xlu1 %v1165_v38, %s2129_s10 }
0x1b18   :  { %v1167_v33 = vpop.permute.xlu1 %1166 }
0x1b19   :  { %1769 = vmatmul.mubr.msk.f32.vlgmr.msra.gmra.mxu1 %vm274_vm2, %v1167_v33 }
0x1b1a   :  { %1790 = vmatprep.mubr.msk.f32.mxu1 %vm2127_vm1, %v2126_v19 }
0x1bd9   :  { %v1236_v39 = vpop.f32.mrf.mxu1 }
0x1bda   :  { %v1241_v40 = vrot.slane %v1236_v39, 6 }
0x1bdb   :  { %v1770_v37 = vpop.f32.mrf.mxu1 }
0x1bdc   :  { %v1243_v41 = vadd.f32 %v1241_v40, %v2381_v1 }
0x1bde   :  { %1930 = vtanh.f32 %v1243_v41  ;;  %v1623_v43 = vmul.f32 -1.442695, %v1243_v41 }
0x1be0   :  { %1932 = vpow2.f32 %v1623_v43 }
0x1beb   :  { %v1931_v42 = vpop.eup %1930 }
0x1bec   :  { %1256 = vrot.lane.b32.xlu0 %v1931_v42, %s2128_s9 }
0x1bed   :  { %v1933_v44 = vpop.eup %1932 }
0x1bee   :  { %v1247_v45 = vadd.f32 1.0, %v1933_v44 }
0x1bf0   :  { %1934 = vrcp.f32 %v1247_v45 }
0x1bfd   :  { %v1935_v46 = vpop.eup %1934 }
0x1bfe   :  { %v1254_v51 = vmul.f32 %v1935_v46, %v1252_v50 }
0x1c5e   :  { %v1257_v48 = vpop.permute.xlu0 %1256 }
0x1c5f   :  { %v1259_v10 = vmul.f32 %v1935_v46, %v1257_v48 }
0x1c61   :  { %1261 = vrot.lane.b32.xlu1 %v1259_v10, %s2129_s10 }
0x1cd3   :  { %v1262_v52 = vpop.permute.xlu1 %1261 }
0x1cd4   :  { %v1264_v53 = vadd.f32 %v1262_v52, %v1254_v51 }
0x1cd6   :  { %1936 = vtanh.f32 %v1264_v53  ;;  %v1359_v8 = vrot.slane %v1264_v53, 7 }
0x1ce3   :  { %v1937_v54 = vpop.eup %1936 }
0x1ce4   :  { %1267 = vrot.lane.b32.xlu0 %v1937_v54, %s2128_s9 }
0x1d56   :  { %v1268_v55 = vpop.permute.xlu0 %1267 }
0x1d57   :  { %v1270_v56 = vmul.f32 %v1935_v46, %v1268_v55 }
0x1d59   :  { %v1272_v58 = vrot.slane %v1270_v56, 2  ;;  %v1379_v59 = vsel %vm768_vm4, %v1378_v57, %v1270_v56 }
0x1d5b   :  { %1273 = vrot.lane.b32.xlu1 %v1272_v58, %s2129_s10 }
0x1dcd   :  { %v1274_v60 = vpop.permute.xlu1 %1273 }
0x1dce   :  { %1780 = vmatmul.mubr.msk.f32.vlgmr.msra.gmra.mxu0 %vm274_vm2, %v1274_v60 }
0x1dcf   :  { %1801 = vmatprep.mubr.msk.f32.mxu0 %vm2127_vm1, %v2126_v19  ;;  %1794 = vmatpush3.msra.mxu0 %v1463_v13 }
0x1dd0   :  { %1795 = vmatprep.subr.mxu0 %v2126_v19 }
0x1dd1   :  { %1796 = vmatpush3.msra.mxu0 %v1462_v14 }
0x1dd2   :  { %1797 = vmatprep.subr.mxu0 %v2126_v19 }
0x1dd3   :  { %1798 = vmatpush3.msra.mxu0 %v1461_v23 }
0x1dd4   :  { %1799 = vmatprep.subr.mxu0 %v2126_v19 }
0x1dd5   :  { %1800 = vmatpush3.msra.mxu0 %v1460_v24 }
0x1e8e   :  { %v1343_v61 = vpop.f32.mrf.mxu0 }
0x1e8f   :  { %v1348_v62 = vrot.slane %v1343_v61, 5 }
0x1e90   :  { %v1781_v63 = vpop.f32.mrf.mxu0 }
0x1e91   :  { %v1350_v0 = vadd.f32 %v1348_v62, %v2381_v1  ;;  %v1384_v1 = vld [vmem:[#allocation10 + $0x18] sm:$0xff] }
0x1e92   :  { %1783 = vmatpush3.msra.mxu1 %v1384_v1 }
0x1e93   :  { %1938 = vtanh.f32 %v1350_v0  ;;  %v1625_v3 = vmul.f32 -1.442695, %v1350_v0  ;;  %1784 = vmatprep.subr.mxu1 %v2126_v19 }
0x1e94   :  { %1785 = vmatpush3.msra.mxu1 %v1383_v47 }
0x1e95   :  { %1940 = vpow2.f32 %v1625_v3  ;;  %1786 = vmatprep.subr.mxu1 %v2126_v19 }
0x1e96   :  { %1787 = vmatpush3.msra.mxu1 %v1382_v15 }
0x1e97   :  { %1788 = vmatprep.subr.mxu1 %v2126_v19 }
0x1e98   :  { %1789 = vmatpush3.msra.mxu1 %v1381_v16 }
0x1ea0   :  { %v1939_v2 = vpop.eup %1938 }
0x1ea1   :  { %1363 = vrot.lane.b32.xlu0 %v1939_v2, %s2128_s9 }
0x1ea2   :  { %v1941_v49 = vpop.eup %1940 }
0x1ea3   :  { %v1354_v4 = vadd.f32 1.0, %v1941_v49 }
0x1ea5   :  { %1942 = vrcp.f32 %v1354_v4 }
0x1eb2   :  { %v1943_v5 = vpop.eup %1942 }
0x1eb3   :  { %v1361_v9 = vmul.f32 %v1943_v5, %v1359_v8 }
0x1f13   :  { %v1364_v6 = vpop.permute.xlu0 %1363 }
0x1f14   :  { %v1366_v7 = vmul.f32 %v1943_v5, %v1364_v6 }
0x1f16   :  { %1368 = vrot.lane.b32.xlu1 %v1366_v7, %s2129_s10 }
0x1f88   :  { %v1369_v11 = vpop.permute.xlu1 %1368 }
0x1f89   :  { %v1371_v12 = vadd.f32 %v1369_v11, %v1361_v9 }
0x1f8b   :  { %1944 = vtanh.f32 %v1371_v12 }
0x1f98   :  { %v1945_v17 = vpop.eup %1944 }
0x1f99   :  { %1374 = vrot.lane.b32.xlu0 %v1945_v17, %s2128_s9  ;;  %s2130_s9 = smov [#allocation13]  }
0x200b   :  { %v1375_v25 = vpop.permute.xlu0 %1374 }
0x200c   :  { %v1377_v26 = vmul.f32 %v1943_v5, %v1375_v25 }
0x200e   :  { %v1380_v20 = vsel %vm770_vm5, %v1379_v59, %v1377_v26 }
0x200f   :  { %1386 = vrot.lane.b32.xlu1 %v1380_v20, %s2129_s10  ;;  %s1583_s10 = sshll.u32 %s2130_s9, 4  ;;  %s1584_s10 = int_to_ptr.vmem [resolvable:$true] %s1583_s10 }
0x2010   :  { %s2066_s17 = scalar_lea.vmem %s1584_s10, 64  ;;  %p2071_p3 = scmp.lt.s32.totalorder %s1584_s10, %s1584_s10 }
0x2011   :  { %p2067_p2 = scmp.ne.s32.totalorder %s1584_s10, %s2066_s17  ;;  %p2072_p4 = scmp.lt.s32.totalorder %s2066_s17, %s2066_s17 }
0x2013   :  { %p2073_p5 = por %p2072_p4, %p2071_p3 }
0x2015   :  { %p2074_p6 = pnand %p2073_p5, %p2067_p2 }
0x2081   :  { %v1387_v27 = vpop.permute.xlu1 %1386 }
0x2082   :  { %1791 = vmatmul.mubr.msk.f32.vlgmr.msra.gmra.mxu1 %vm274_vm2, %v1387_v27  ;;  %1802 = vmatmul.mubr.msk.f32.vlgmr.msra.gmra.mxu0 %vm274_vm2, %v1387_v27 }
0x2142   :  { %v1456_v28 = vpop.f32.mrf.mxu1  ;;  %v1530_v22 = vpop.f32.mrf.mxu0 }
0x2143   :  { %v1534_v19 = vsel %vm117_vm0, %v1456_v28, -inf  ;;  %v1556_v29 = vsel %vm1555_vm6, %v1530_v22, -inf }
0x2144   :  { %v1535_v30 = vrot.slane %v1534_v19, 4  ;;  %v1557_v34 = vrot.slane %v1556_v29, 4  ;;  %v1792_v31 = vpop.f32.mrf.mxu1  ;;  %v1803_v18 = vpop.f32.mrf.mxu0 }
0x2146   :  { %v1536_v32 = vmax.f32 %v1534_v19, %v1535_v30  ;;  %v1558_v35 = vmax.f32 %v1556_v29, %v1557_v34 }
0x2148   :  { %v1537_v21 = vrot.slane %v1536_v32, 2  ;;  %v1559_v36 = vrot.slane %v1558_v35, 2 }
0x214a   :  { %v1538_v38 = vmax.f32 %v1536_v32, %v1537_v21  ;;  %v1560_v33 = vmax.f32 %v1558_v35, %v1559_v36 }
0x214c   :  { %v1539_v39 = vrot.slane %v1538_v38, 1  ;;  %v1561_v40 = vrot.slane %v1560_v33, 1 }
0x214e   :  { %v1540_v37 = vmax.f32 %v1538_v38, %v1539_v39  ;;  %v1562_v41 = vmax.f32 %v1560_v33, %v1561_v40 }
0x2150   :  { %v1541_v42 = vsub.f32 %v1456_v28, %v1540_v37  ;;  %v1563_v43 = vsub.f32 %v1530_v22, %v1562_v41 }
0x2152   :  { %v1542_v44 = vmul.f32 1.442695, %v1541_v42  ;;  %v1564_v45 = vmul.f32 1.442695, %v1563_v43 }
0x2154   :  { %1946 = vpow2.f32 %v1542_v44 }
0x2155   :  { %1948 = vpow2.f32 %v1564_v45 }
0x2161   :  { %v1947_v46 = vpop.eup %1946 }
0x2162   :  { %v1949_v48 = vpop.eup %1948  ;;  %v1544_v10 = vsel %vm117_vm0, %v1947_v46, 0.0 }
0x2163   :  { %v1566_v50 = vsel %vm1555_vm6, %v1949_v48, 0.0  ;;  %v1545_v51 = vrot.slane %v1544_v10, 4 }
0x2164   :  { %v1567_v52 = vrot.slane %v1566_v50, 4 }
0x2165   :  { %v1546_v53 = vadd.f32 %v1545_v51, %v1544_v10 }
0x2166   :  { %v1568_v54 = vadd.f32 %v1567_v52, %v1566_v50 }
0x2167   :  { %v1547_v55 = vrot.slane %v1546_v53, 2 }
0x2168   :  { %v1569_v56 = vrot.slane %v1568_v54, 2 }
0x2169   :  { %v1548_v57 = vadd.f32 %v1547_v55, %v1546_v53 }
0x216a   :  { %v1570_v58 = vadd.f32 %v1569_v56, %v1568_v54 }
0x216b   :  { %v1549_v59 = vrot.slane %v1548_v57, 1 }
0x216c   :  { %v1571_v60 = vrot.slane %v1570_v58, 1 }
0x216d   :  { %v1550_v61 = vadd.f32 %v1549_v59, %v1548_v57 }
0x216e   :  { %v1572_v62 = vadd.f32 %v1571_v60, %v1570_v58 }
0x216f   :  { %1950 = vlog2.f32 %v1550_v61 }
0x2170   :  { %1952 = vlog2.f32 %v1572_v62 }
0x217c   :  { %v1951_v63 = vpop.eup %1950 }
0x217d   :  { %v1953_v0 = vpop.eup %1952  ;;  %v1552_v2 = vmul.f32 0.6931472, %v1951_v63 }
0x217e   :  { %v1574_v3 = vmul.f32 0.6931472, %v1953_v0 }
0x217f   :  { %v1553_v49 = vsub.f32 %v1541_v42, %v1552_v2 }
0x2180   :  { %v1575_v4 = vsub.f32 %v1563_v43, %v1574_v3 }
0x2181   :  { %1554 = vst.msk [vmem:[#allocation13] sm:$0xf] %vm117_vm0, %v1553_v49 }
0x2182   :  { %2077 = shalt.err (!%p2074_p6)
}
0x2183   :  { %1586 = dma.vmem_to_hbm [thread:$0]  %s1584_s10, 64, %s2454_s6, [#allocation4]   ;;  %1576 = vst.msk [vmem:[#allocation14] sm:$0xf] %vm1555_vm6, %v1575_v4 }
0x2184   :  { %s2086_s20 = scalar_lea.vmem %s1594_s16, 64  ;;  %p2091_p8 = scmp.lt.s32.totalorder %s1594_s16, %s1594_s16 }
0x2185   :  { %p2087_p7 = scmp.ne.s32.totalorder %s1594_s16, %s2086_s20  ;;  %p2092_p9 = scmp.lt.s32.totalorder %s2086_s20, %s2086_s20 }
0x2187   :  { %p2093_p10 = por %p2092_p9, %p2091_p8 }
0x2189   :  { %p2094_p11 = pnand %p2093_p10, %p2087_p7 }
0x218b   :  { %2097 = shalt.err (!%p2094_p11)
}
0x218c   :  { %1596 = dma.vmem_to_hbm [thread:$0]  %s1594_s16, 64, %s2455_s7, [#allocation15]  }
0x218d   :  { %2114 = dma.done.wait [#allocation4], 64  }
0x218e   :  { %2115 = vsyncadd [#allocation4], 4294967232 }
0x218f   :  { %2116 = dma.done.wait [#allocation15], 64  }
0x2190   :  { %2117 = vsyncadd [#allocation15], 4294967232 }
0x2191   :  { %1603 = vsyncpa [#allocation3], 1 }
0x2192   :  { %1604 = vsyncpa [#allocation8], 1 }
0x2193   :  { %1605 = vsyncpa [#allocation11], 1 }
0x2194   :  { %1606 = vsyncpa [#allocation4], 1 }
0x2195   :  { %1607 = vsyncpa [#allocation15], 1 }
0x2196   :  { %1608 = vsyncpa [#allocation5], 1 }

</bundles_post_ra>
